<compile_context>
chip_gen: v7x
topology: tpu7x:2x2x1
jax: 0.10.0
libtpu: 0.0.40
codegen_flags: <defaults>
</compile_context>

<pallas_src>
import jax
import jax.numpy as jnp
from jax.experimental import pallas as pl
from jax.experimental.pallas import tpu as pltpu

HEAD_PAD = 128  # fused head output lanes (class_cnt + reg_dim zero-padded to 128)


def _linear(h, w_ref, b_ref, relu):
    # bf16 MXU operands, f32 accumulate; bias-add / ReLU stay in f32 so the
    # elementwise path is native on v5e (no bf16 VPU) as well as v6e/v7x.
    y = jnp.dot(h.astype(jnp.bfloat16), w_ref[...],
                preferred_element_type=jnp.float32) + b_ref[...]
    return jnp.maximum(y, 0.0) if relu else y


def ae_regression_kernel(x_ref,
                         ew1, eb1, ew2, eb2, ew3, eb3, ew4, eb4,
                         dw1, db1, dw2, db2, dw3, db3, dw4, db4,
                         hw, hb,
                         head_ref):
    h = x_ref[...]  # bf16 [TB, 256]

    # ---- encoder: Linear+ReLU x4 (dropouts are identity at inference) ----
    h = _linear(h, ew1, eb1, True)   # 256 -> 256
    h = _linear(h, ew2, eb2, True)   # 256 -> 256
    h = _linear(h, ew3, eb3, True)   # 256 -> 128
    h = _linear(h, ew4, eb4, True)   # 128 -> 128

    # ---- decoder ----
    h = _linear(h, dw1, db1, True)   # 128 -> 128
    h = _linear(h, dw2, db2, True)   # 128 -> 128
    h = _linear(h, dw3, db3, True)   # 128 -> 256
    h = _linear(h, dw4, db4, False)  # 256 -> 256 (no ReLU on last decoder layer)

    # ---- fused classification + regression heads (one 128-lane matmul) ----
    head_ref[...] = _linear(h, hw, hb, False).astype(head_ref.dtype)


def init_params(key, class_cnt, regression_out_dim):
    """Deterministic PyTorch-style (uniform +-1/sqrt(fan_in)) Linear init."""
    dims = [
        # encoder
        (256, 256), (256, 256), (256, 128), (128, 128),
        # decoder
        (128, 128), (128, 128), (128, 256), (256, 256),
        # heads
        (256, class_cnt), (256, regression_out_dim),
    ]
    params = []
    for (fan_in, fan_out) in dims:
        key, kw, kb = jax.random.split(key, 3)
        bound = 1.0 / jnp.sqrt(fan_in)
        w = jax.random.uniform(kw, (fan_in, fan_out), jnp.float32, -bound, bound)
        b = jax.random.uniform(kb, (1, fan_out), jnp.float32, -bound, bound)
        params.append((w, b))
    return params


def ae_regression_forward(x, params, *, tb=256):
    B, D = x.shape
    assert D == 256
    class_cnt = params[8][0].shape[1]
    reg_dim = params[9][0].shape[1]
    assert class_cnt + reg_dim <= HEAD_PAD

    # ---- fuse the two heads into one zero-padded [256, 128] weight/bias ----
    cw, cb = params[8]
    rw, rb = params[9]
    hw = jnp.zeros((256, HEAD_PAD), jnp.float32)
    hw = hw.at[:, :class_cnt].set(cw)
    hw = hw.at[:, class_cnt:class_cnt + reg_dim].set(rw)
    hb = jnp.zeros((1, HEAD_PAD), jnp.float32)
    hb = hb.at[:, :class_cnt].set(cb)
    hb = hb.at[:, class_cnt:class_cnt + reg_dim].set(rb)

    # bf16 weights (halve weight DMA + full-rate MXU), f32 biases.
    flat_params = []
    for w, b in params[:8]:
        flat_params += [w.astype(jnp.bfloat16), b]
    flat_params += [hw.astype(jnp.bfloat16), hb]

    # ---- pad / tile the batch axis ----
    b_pad = ((B + 127) // 128) * 128       # sublane / MXU-M friendly minimum
    tb = min(tb, b_pad)
    b_pad = ((B + tb - 1) // tb) * tb
    x = x.astype(jnp.bfloat16)
    if b_pad != B:
        x = jnp.pad(x, ((0, b_pad - B), (0, 0)))
    grid = (b_pad // tb,)

    def resident(arr):
        # Whole array as one block, constant block index -> stays in VMEM
        # across all grid steps.
        return pl.BlockSpec(arr.shape, lambda i: (0,) * arr.ndim)

    in_specs = [pl.BlockSpec((tb, 256), lambda i: (i, 0))]
    in_specs += [resident(p) for p in flat_params]

    out_shape = jax.ShapeDtypeStruct((b_pad, HEAD_PAD), jnp.float32)
    out_specs = pl.BlockSpec((tb, HEAD_PAD), lambda i: (i, 0))

    head = pl.pallas_call(
        ae_regression_kernel,
        out_shape=out_shape,
        grid_spec=pltpu.PrefetchScalarGridSpec(
            num_scalar_prefetch=0,
            grid=grid,
            in_specs=in_specs,
            out_specs=out_specs,
        ),
        compiler_params=pltpu.CompilerParams(
            dimension_semantics=("parallel",)),   # batch tiles are independent
    )(x, *flat_params)

    cls_out = head[:B, :class_cnt]
    reg_out = head[:B, class_cnt:class_cnt + reg_dim]
    return cls_out, reg_out


def _reference(x, params):
    """Pure JAX reference mimicking the kernel's bf16-operand / f32-accum math."""
    def lin(h, w, b, relu):
        y = jnp.dot(h.astype(jnp.bfloat16), w.astype(jnp.bfloat16),
                    preferred_element_type=jnp.float32) + b
        return jnp.maximum(y, 0.0) if relu else y

    h = x.astype(jnp.float32)
    relu_flags = [True, True, True, True, True, True, True, False]
    for (w, b), r in zip(params[:8], relu_flags):
        h = lin(h, w, b, r)
    cw, cb = params[8]
    rw, rb = params[9]
    return lin(h, cw, cb, False), lin(h, rw, rb, False)


if __name__ == "__main__":
    CLASS_CNT = 10
    REG_DIM = 3
    B = 8

    key = jax.random.PRNGKey(0)
    key, kx = jax.random.split(key)
    x = jax.random.normal(kx, (B, 256), jnp.float32)
    params = init_params(key, CLASS_CNT, REG_DIM)

    cls_out, reg_out = ae_regression_forward(x, params)
    cls_out = jax.block_until_ready(cls_out)
    reg_out = jax.block_until_ready(reg_out)

    cls_ref, reg_ref = _reference(x, params)
    assert cls_out.shape == (B, CLASS_CNT)
    assert reg_out.shape == (B, REG_DIM)
    assert jnp.allclose(cls_out, cls_ref, atol=2e-2, rtol=2e-2)
    assert jnp.allclose(reg_out, reg_ref, atol=2e-2, rtol=2e-2)

    print("KERNEL_OK")
</pallas_src>

<mosaic_0001>
module attributes {stable_mosaic.version = 11 : i64} {
  func.func @ae_regression_kernel(%arg0: i32, %arg1: memref<128x256xbf16, #tpu.memory_space<vmem>>, %arg2: memref<256x256xbf16, #tpu.memory_space<vmem>>, %arg3: memref<1x256xf32, #tpu.memory_space<vmem>>, %arg4: memref<256x256xbf16, #tpu.memory_space<vmem>>, %arg5: memref<1x256xf32, #tpu.memory_space<vmem>>, %arg6: memref<256x128xbf16, #tpu.memory_space<vmem>>, %arg7: memref<1x128xf32, #tpu.memory_space<vmem>>, %arg8: memref<128x128xbf16, #tpu.memory_space<vmem>>, %arg9: memref<1x128xf32, #tpu.memory_space<vmem>>, %arg10: memref<128x128xbf16, #tpu.memory_space<vmem>>, %arg11: memref<1x128xf32, #tpu.memory_space<vmem>>, %arg12: memref<128x128xbf16, #tpu.memory_space<vmem>>, %arg13: memref<1x128xf32, #tpu.memory_space<vmem>>, %arg14: memref<128x256xbf16, #tpu.memory_space<vmem>>, %arg15: memref<1x256xf32, #tpu.memory_space<vmem>>, %arg16: memref<256x256xbf16, #tpu.memory_space<vmem>>, %arg17: memref<1x256xf32, #tpu.memory_space<vmem>>, %arg18: memref<256x128xbf16, #tpu.memory_space<vmem>>, %arg19: memref<1x128xf32, #tpu.memory_space<vmem>>, %arg20: memref<128x128xf32, #tpu.memory_space<vmem>>) attributes {dimension_semantics = [#tpu.dimension_semantics<parallel>], iteration_bounds = array<i64: 1>, scalar_prefetch = 0 : i64, scratch_operands = 0 : i64, tpu.core_type = #tpu.core_type<tc>, window_params = [{transform_indices = @transform_0, window_bounds = array<i64: 128, 256>}, {pipeline_mode = #tpu.pipeline_mode<synchronous>, transform_indices = @transform_1, window_bounds = array<i64: 256, 256>}, {pipeline_mode = #tpu.pipeline_mode<synchronous>, transform_indices = @transform_2, window_bounds = array<i64: 1, 256>}, {pipeline_mode = #tpu.pipeline_mode<synchronous>, transform_indices = @transform_3, window_bounds = array<i64: 256, 256>}, {pipeline_mode = #tpu.pipeline_mode<synchronous>, transform_indices = @transform_4, window_bounds = array<i64: 1, 256>}, {pipeline_mode = #tpu.pipeline_mode<synchronous>, transform_indices = @transform_5, window_bounds = array<i64: 256, 128>}, {pipeline_mode = #tpu.pipeline_mode<synchronous>, transform_indices = @transform_6, window_bounds = array<i64: 1, 128>}, {pipeline_mode = #tpu.pipeline_mode<synchronous>, transform_indices = @transform_7, window_bounds = array<i64: 128, 128>}, {pipeline_mode = #tpu.pipeline_mode<synchronous>, transform_indices = @transform_8, window_bounds = array<i64: 1, 128>}, {pipeline_mode = #tpu.pipeline_mode<synchronous>, transform_indices = @transform_9, window_bounds = array<i64: 128, 128>}, {pipeline_mode = #tpu.pipeline_mode<synchronous>, transform_indices = @transform_10, window_bounds = array<i64: 1, 128>}, {pipeline_mode = #tpu.pipeline_mode<synchronous>, transform_indices = @transform_11, window_bounds = array<i64: 128, 128>}, {pipeline_mode = #tpu.pipeline_mode<synchronous>, transform_indices = @transform_12, window_bounds = array<i64: 1, 128>}, {pipeline_mode = #tpu.pipeline_mode<synchronous>, transform_indices = @transform_13, window_bounds = array<i64: 128, 256>}, {pipeline_mode = #tpu.pipeline_mode<synchronous>, transform_indices = @transform_14, window_bounds = array<i64: 1, 256>}, {pipeline_mode = #tpu.pipeline_mode<synchronous>, transform_indices = @transform_15, window_bounds = array<i64: 256, 256>}, {pipeline_mode = #tpu.pipeline_mode<synchronous>, transform_indices = @transform_16, window_bounds = array<i64: 1, 256>}, {pipeline_mode = #tpu.pipeline_mode<synchronous>, transform_indices = @transform_17, window_bounds = array<i64: 256, 128>}, {pipeline_mode = #tpu.pipeline_mode<synchronous>, transform_indices = @transform_18, window_bounds = array<i64: 1, 128>}, {transform_indices = @transform_19, window_bounds = array<i64: 128, 128>}]} {
    %c0 = arith.constant 0 : index
    %c0_0 = arith.constant 0 : index
    %0 = vector.load %arg1[%c0, %c0_0] : memref<128x256xbf16, #tpu.memory_space<vmem>>, vector<128x256xbf16>
    %c0_1 = arith.constant 0 : index
    %c0_2 = arith.constant 0 : index
    %1 = vector.load %arg2[%c0_1, %c0_2] : memref<256x256xbf16, #tpu.memory_space<vmem>>, vector<256x256xbf16>
    %cst = arith.constant dense<0.000000e+00> : vector<128x256xf32>
    %2 = tpu.matmul %0, %1, %cst {dimension_numbers = #tpu.dot_dimension_numbers<[1], [0], [0], [1], [0, 0, 1, 1], [], []>} : vector<128x256xbf16>, vector<256x256xbf16>, vector<128x256xf32> -> vector<128x256xf32>
    %c0_3 = arith.constant 0 : index
    %c0_4 = arith.constant 0 : index
    %3 = vector.load %arg3[%c0_3, %c0_4] : memref<1x256xf32, #tpu.memory_space<vmem>>, vector<1x256xf32>
    %4 = vector.broadcast %3 : vector<1x256xf32> to vector<128x256xf32>
    %5 = arith.addf %2, %4 : vector<128x256xf32>
    %cst_5 = arith.constant 0.000000e+00 : f32
    %6 = vector.broadcast %cst_5 : f32 to vector<128x256xf32>
    %7 = arith.maximumf %5, %6 : vector<128x256xf32>
    %8 = arith.truncf %7 : vector<128x256xf32> to vector<128x256xbf16>
    %c0_6 = arith.constant 0 : index
    %c0_7 = arith.constant 0 : index
    %9 = vector.load %arg4[%c0_6, %c0_7] : memref<256x256xbf16, #tpu.memory_space<vmem>>, vector<256x256xbf16>
    %cst_8 = arith.constant dense<0.000000e+00> : vector<128x256xf32>
    %10 = tpu.matmul %8, %9, %cst_8 {dimension_numbers = #tpu.dot_dimension_numbers<[1], [0], [0], [1], [0, 0, 1, 1], [], []>} : vector<128x256xbf16>, vector<256x256xbf16>, vector<128x256xf32> -> vector<128x256xf32>
    %c0_9 = arith.constant 0 : index
    %c0_10 = arith.constant 0 : index
    %11 = vector.load %arg5[%c0_9, %c0_10] : memref<1x256xf32, #tpu.memory_space<vmem>>, vector<1x256xf32>
    %12 = vector.broadcast %11 : vector<1x256xf32> to vector<128x256xf32>
    %13 = arith.addf %10, %12 : vector<128x256xf32>
    %cst_11 = arith.constant 0.000000e+00 : f32
    %14 = vector.broadcast %cst_11 : f32 to vector<128x256xf32>
    %15 = arith.maximumf %13, %14 : vector<128x256xf32>
    %16 = arith.truncf %15 : vector<128x256xf32> to vector<128x256xbf16>
    %c0_12 = arith.constant 0 : index
    %c0_13 = arith.constant 0 : index
    %17 = vector.load %arg6[%c0_12, %c0_13] : memref<256x128xbf16, #tpu.memory_space<vmem>>, vector<256x128xbf16>
    %cst_14 = arith.constant dense<0.000000e+00> : vector<128x128xf32>
    %18 = tpu.matmul %16, %17, %cst_14 {dimension_numbers = #tpu.dot_dimension_numbers<[1], [0], [0], [1], [0, 0, 1, 1], [], []>} : vector<128x256xbf16>, vector<256x128xbf16>, vector<128x128xf32> -> vector<128x128xf32>
    %c0_15 = arith.constant 0 : index
    %c0_16 = arith.constant 0 : index
    %19 = vector.load %arg7[%c0_15, %c0_16] : memref<1x128xf32, #tpu.memory_space<vmem>>, vector<1x128xf32>
    %20 = vector.broadcast %19 : vector<1x128xf32> to vector<128x128xf32>
    %21 = arith.addf %18, %20 : vector<128x128xf32>
    %cst_17 = arith.constant 0.000000e+00 : f32
    %22 = vector.broadcast %cst_17 : f32 to vector<128x128xf32>
    %23 = arith.maximumf %21, %22 : vector<128x128xf32>
    %24 = arith.truncf %23 : vector<128x128xf32> to vector<128x128xbf16>
    %c0_18 = arith.constant 0 : index
    %c0_19 = arith.constant 0 : index
    %25 = vector.load %arg8[%c0_18, %c0_19] : memref<128x128xbf16, #tpu.memory_space<vmem>>, vector<128x128xbf16>
    %cst_20 = arith.constant dense<0.000000e+00> : vector<128x128xf32>
    %26 = tpu.matmul %24, %25, %cst_20 {dimension_numbers = #tpu.dot_dimension_numbers<[1], [0], [0], [1], [0, 0, 1, 1], [], []>} : vector<128x128xbf16>, vector<128x128xbf16>, vector<128x128xf32> -> vector<128x128xf32>
    %c0_21 = arith.constant 0 : index
    %c0_22 = arith.constant 0 : index
    %27 = vector.load %arg9[%c0_21, %c0_22] : memref<1x128xf32, #tpu.memory_space<vmem>>, vector<1x128xf32>
    %28 = vector.broadcast %27 : vector<1x128xf32> to vector<128x128xf32>
    %29 = arith.addf %26, %28 : vector<128x128xf32>
    %cst_23 = arith.constant 0.000000e+00 : f32
    %30 = vector.broadcast %cst_23 : f32 to vector<128x128xf32>
    %31 = arith.maximumf %29, %30 : vector<128x128xf32>
    %32 = arith.truncf %31 : vector<128x128xf32> to vector<128x128xbf16>
    %c0_24 = arith.constant 0 : index
    %c0_25 = arith.constant 0 : index
    %33 = vector.load %arg10[%c0_24, %c0_25] : memref<128x128xbf16, #tpu.memory_space<vmem>>, vector<128x128xbf16>
    %cst_26 = arith.constant dense<0.000000e+00> : vector<128x128xf32>
    %34 = tpu.matmul %32, %33, %cst_26 {dimension_numbers = #tpu.dot_dimension_numbers<[1], [0], [0], [1], [0, 0, 1, 1], [], []>} : vector<128x128xbf16>, vector<128x128xbf16>, vector<128x128xf32> -> vector<128x128xf32>
    %c0_27 = arith.constant 0 : index
    %c0_28 = arith.constant 0 : index
    %35 = vector.load %arg11[%c0_27, %c0_28] : memref<1x128xf32, #tpu.memory_space<vmem>>, vector<1x128xf32>
    %36 = vector.broadcast %35 : vector<1x128xf32> to vector<128x128xf32>
    %37 = arith.addf %34, %36 : vector<128x128xf32>
    %cst_29 = arith.constant 0.000000e+00 : f32
    %38 = vector.broadcast %cst_29 : f32 to vector<128x128xf32>
    %39 = arith.maximumf %37, %38 : vector<128x128xf32>
    %40 = arith.truncf %39 : vector<128x128xf32> to vector<128x128xbf16>
    %c0_30 = arith.constant 0 : index
    %c0_31 = arith.constant 0 : index
    %41 = vector.load %arg12[%c0_30, %c0_31] : memref<128x128xbf16, #tpu.memory_space<vmem>>, vector<128x128xbf16>
    %cst_32 = arith.constant dense<0.000000e+00> : vector<128x128xf32>
    %42 = tpu.matmul %40, %41, %cst_32 {dimension_numbers = #tpu.dot_dimension_numbers<[1], [0], [0], [1], [0, 0, 1, 1], [], []>} : vector<128x128xbf16>, vector<128x128xbf16>, vector<128x128xf32> -> vector<128x128xf32>
    %c0_33 = arith.constant 0 : index
    %c0_34 = arith.constant 0 : index
    %43 = vector.load %arg13[%c0_33, %c0_34] : memref<1x128xf32, #tpu.memory_space<vmem>>, vector<1x128xf32>
    %44 = vector.broadcast %43 : vector<1x128xf32> to vector<128x128xf32>
    %45 = arith.addf %42, %44 : vector<128x128xf32>
    %cst_35 = arith.constant 0.000000e+00 : f32
    %46 = vector.broadcast %cst_35 : f32 to vector<128x128xf32>
    %47 = arith.maximumf %45, %46 : vector<128x128xf32>
    %48 = arith.truncf %47 : vector<128x128xf32> to vector<128x128xbf16>
    %c0_36 = arith.constant 0 : index
    %c0_37 = arith.constant 0 : index
    %49 = vector.load %arg14[%c0_36, %c0_37] : memref<128x256xbf16, #tpu.memory_space<vmem>>, vector<128x256xbf16>
    %cst_38 = arith.constant dense<0.000000e+00> : vector<128x256xf32>
    %50 = tpu.matmul %48, %49, %cst_38 {dimension_numbers = #tpu.dot_dimension_numbers<[1], [0], [0], [1], [0, 0, 1, 1], [], []>} : vector<128x128xbf16>, vector<128x256xbf16>, vector<128x256xf32> -> vector<128x256xf32>
    %c0_39 = arith.constant 0 : index
    %c0_40 = arith.constant 0 : index
    %51 = vector.load %arg15[%c0_39, %c0_40] : memref<1x256xf32, #tpu.memory_space<vmem>>, vector<1x256xf32>
    %52 = vector.broadcast %51 : vector<1x256xf32> to vector<128x256xf32>
    %53 = arith.addf %50, %52 : vector<128x256xf32>
    %cst_41 = arith.constant 0.000000e+00 : f32
    %54 = vector.broadcast %cst_41 : f32 to vector<128x256xf32>
    %55 = arith.maximumf %53, %54 : vector<128x256xf32>
    %56 = arith.truncf %55 : vector<128x256xf32> to vector<128x256xbf16>
    %c0_42 = arith.constant 0 : index
    %c0_43 = arith.constant 0 : index
    %57 = vector.load %arg16[%c0_42, %c0_43] : memref<256x256xbf16, #tpu.memory_space<vmem>>, vector<256x256xbf16>
    %cst_44 = arith.constant dense<0.000000e+00> : vector<128x256xf32>
    %58 = tpu.matmul %56, %57, %cst_44 {dimension_numbers = #tpu.dot_dimension_numbers<[1], [0], [0], [1], [0, 0, 1, 1], [], []>} : vector<128x256xbf16>, vector<256x256xbf16>, vector<128x256xf32> -> vector<128x256xf32>
    %c0_45 = arith.constant 0 : index
    %c0_46 = arith.constant 0 : index
    %59 = vector.load %arg17[%c0_45, %c0_46] : memref<1x256xf32, #tpu.memory_space<vmem>>, vector<1x256xf32>
    %60 = vector.broadcast %59 : vector<1x256xf32> to vector<128x256xf32>
    %61 = arith.addf %58, %60 : vector<128x256xf32>
    %62 = arith.truncf %61 : vector<128x256xf32> to vector<128x256xbf16>
    %c0_47 = arith.constant 0 : index
    %c0_48 = arith.constant 0 : index
    %63 = vector.load %arg18[%c0_47, %c0_48] : memref<256x128xbf16, #tpu.memory_space<vmem>>, vector<256x128xbf16>
    %cst_49 = arith.constant dense<0.000000e+00> : vector<128x128xf32>
    %64 = tpu.matmul %62, %63, %cst_49 {dimension_numbers = #tpu.dot_dimension_numbers<[1], [0], [0], [1], [0, 0, 1, 1], [], []>} : vector<128x256xbf16>, vector<256x128xbf16>, vector<128x128xf32> -> vector<128x128xf32>
    %c0_50 = arith.constant 0 : index
    %c0_51 = arith.constant 0 : index
    %65 = vector.load %arg19[%c0_50, %c0_51] : memref<1x128xf32, #tpu.memory_space<vmem>>, vector<1x128xf32>
    %66 = vector.broadcast %65 : vector<1x128xf32> to vector<128x128xf32>
    %67 = arith.addf %64, %66 : vector<128x128xf32>
    %c0_52 = arith.constant 0 : index
    %c0_53 = arith.constant 0 : index
    %68 = vector.load %arg20[%c0_52, %c0_53] : memref<128x128xf32, #tpu.memory_space<vmem>>, vector<128x128xf32>
    tpu.vector_store %arg20[%c0_52, %c0_53], %67 {strides = array<i32>} : memref<128x128xf32, #tpu.memory_space<vmem>>, vector<128x128xf32>,
    return
  }
  func.func @transform_0(%arg0: i32) -> (i32, i32) {
    %c0_i32 = arith.constant 0 : i32
    %c0_i32_0 = arith.constant 0 : i32
    return %arg0, %c0_i32 : i32, i32
  }
  func.func @transform_1(%arg0: i32) -> (i32, i32) {
    %c0_i32 = arith.constant 0 : i32
    %c0_i32_0 = arith.constant 0 : i32
    %c0_i32_1 = arith.constant 0 : i32
    return %c0_i32, %c0_i32_0 : i32, i32
  }
  func.func @transform_2(%arg0: i32) -> (i32, i32) {
    %c0_i32 = arith.constant 0 : i32
    %c0_i32_0 = arith.constant 0 : i32
    %c0_i32_1 = arith.constant 0 : i32
    return %c0_i32, %c0_i32_0 : i32, i32
  }
  func.func @transform_3(%arg0: i32) -> (i32, i32) {
    %c0_i32 = arith.constant 0 : i32
    %c0_i32_0 = arith.constant 0 : i32
    %c0_i32_1 = arith.constant 0 : i32
    return %c0_i32, %c0_i32_0 : i32, i32
  }
  func.func @transform_4(%arg0: i32) -> (i32, i32) {
    %c0_i32 = arith.constant 0 : i32
    %c0_i32_0 = arith.constant 0 : i32
    %c0_i32_1 = arith.constant 0 : i32
    return %c0_i32, %c0_i32_0 : i32, i32
  }
  func.func @transform_5(%arg0: i32) -> (i32, i32) {
    %c0_i32 = arith.constant 0 : i32
    %c0_i32_0 = arith.constant 0 : i32
    %c0_i32_1 = arith.constant 0 : i32
    return %c0_i32, %c0_i32_0 : i32, i32
  }
  func.func @transform_6(%arg0: i32) -> (i32, i32) {
    %c0_i32 = arith.constant 0 : i32
    %c0_i32_0 = arith.constant 0 : i32
    %c0_i32_1 = arith.constant 0 : i32
    return %c0_i32, %c0_i32_0 : i32, i32
  }
  func.func @transform_7(%arg0: i32) -> (i32, i32) {
    %c0_i32 = arith.constant 0 : i32
    %c0_i32_0 = arith.constant 0 : i32
    %c0_i32_1 = arith.constant 0 : i32
    return %c0_i32, %c0_i32_0 : i32, i32
  }
  func.func @transform_8(%arg0: i32) -> (i32, i32) {
    %c0_i32 = arith.constant 0 : i32
    %c0_i32_0 = arith.constant 0 : i32
    %c0_i32_1 = arith.constant 0 : i32
    return %c0_i32, %c0_i32_0 : i32, i32
  }
  func.func @transform_9(%arg0: i32) -> (i32, i32) {
    %c0_i32 = arith.constant 0 : i32
    %c0_i32_0 = arith.constant 0 : i32
    %c0_i32_1 = arith.constant 0 : i32
    return %c0_i32, %c0_i32_0 : i32, i32
  }
  func.func @transform_10(%arg0: i32) -> (i32, i32) {
    %c0_i32 = arith.constant 0 : i32
    %c0_i32_0 = arith.constant 0 : i32
    %c0_i32_1 = arith.constant 0 : i32
    return %c0_i32, %c0_i32_0 : i32, i32
  }
  func.func @transform_11(%arg0: i32) -> (i32, i32) {
    %c0_i32 = arith.constant 0 : i32
    %c0_i32_0 = arith.constant 0 : i32
    %c0_i32_1 = arith.constant 0 : i32
    return %c0_i32, %c0_i32_0 : i32, i32
  }
  func.func @transform_12(%arg0: i32) -> (i32, i32) {
    %c0_i32 = arith.constant 0 : i32
    %c0_i32_0 = arith.constant 0 : i32
    %c0_i32_1 = arith.constant 0 : i32
    return %c0_i32, %c0_i32_0 : i32, i32
  }
  func.func @transform_13(%arg0: i32) -> (i32, i32) {
    %c0_i32 = arith.constant 0 : i32
    %c0_i32_0 = arith.constant 0 : i32
    %c0_i32_1 = arith.constant 0 : i32
    return %c0_i32, %c0_i32_0 : i32, i32
  }
  func.func @transform_14(%arg0: i32) -> (i32, i32) {
    %c0_i32 = arith.constant 0 : i32
    %c0_i32_0 = arith.constant 0 : i32
    %c0_i32_1 = arith.constant 0 : i32
    return %c0_i32, %c0_i32_0 : i32, i32
  }
  func.func @transform_15(%arg0: i32) -> (i32, i32) {
    %c0_i32 = arith.constant 0 : i32
    %c0_i32_0 = arith.constant 0 : i32
    %c0_i32_1 = arith.constant 0 : i32
    return %c0_i32, %c0_i32_0 : i32, i32
  }
  func.func @transform_16(%arg0: i32) -> (i32, i32) {
    %c0_i32 = arith.constant 0 : i32
    %c0_i32_0 = arith.constant 0 : i32
    %c0_i32_1 = arith.constant 0 : i32
    return %c0_i32, %c0_i32_0 : i32, i32
  }
  func.func @transform_17(%arg0: i32) -> (i32, i32) {
    %c0_i32 = arith.constant 0 : i32
    %c0_i32_0 = arith.constant 0 : i32
    %c0_i32_1 = arith.constant 0 : i32
    return %c0_i32, %c0_i32_0 : i32, i32
  }
  func.func @transform_18(%arg0: i32) -> (i32, i32) {
    %c0_i32 = arith.constant 0 : i32
    %c0_i32_0 = arith.constant 0 : i32
    %c0_i32_1 = arith.constant 0 : i32
    return %c0_i32, %c0_i32_0 : i32, i32
  }
  func.func @transform_19(%arg0: i32) -> (i32, i32) {
    %c0_i32 = arith.constant 0 : i32
    %c0_i32_0 = arith.constant 0 : i32
    return %arg0, %c0_i32 : i32, i32
  }
}

</mosaic_0001>

<bundles_post_ra>
// kernel: tpu_custom_call.1
= control target key start
LH: loop header
LB: loop body
LE: loop exit
PB: predicated region body
PF: predicated region fallthrough
CT: control target
= control target key end

     0   :  { %s4254_s0 = inlined_call_operand.hbm [shape: bf16[128,256], index: 0, kind: input, shape index: {}]   ;;  %s4255_s1 = inlined_call_operand.hbm [shape: bf16[256,256], index: 1, kind: input, shape index: {}]   ;;  %s4256_s2 = inlined_call_operand.vmem [shape: f32[1,256], index: 2, kind: input, shape index: {}]   ;;  %s4257_s3 = inlined_call_operand.hbm [shape: bf16[256,256], index: 3, kind: input, shape index: {}]   ;;  %s4258_s4 = inlined_call_operand.vmem [shape: f32[1,256], index: 4, kind: input, shape index: {}]   ;;  %s4259_s5 = inlined_call_operand.hbm [shape: bf16[256,128], index: 5, kind: input, shape index: {}]   ;;  %s4260_s6 = inlined_call_operand.vmem [shape: f32[1,128], index: 6, kind: input, shape index: {}]   ;;  %s4261_s7 = inlined_call_operand.hbm [shape: bf16[128,128], index: 7, kind: input, shape index: {}]   ;;  %s4262_s8 = inlined_call_operand.vmem [shape: f32[1,128], index: 8, kind: input, shape index: {}]   ;;  %s4263_s9 = inlined_call_operand.hbm [shape: bf16[128,128], index: 9, kind: input, shape index: {}]   ;;  %s4264_s10 = inlined_call_operand.vmem [shape: f32[1,128], index: 10, kind: input, shape index: {}]   ;;  %s4265_s11 = inlined_call_operand.hbm [shape: bf16[128,128], index: 11, kind: input, shape index: {}]   ;;  %s4266_s12 = inlined_call_operand.vmem [shape: f32[1,128], index: 12, kind: input, shape index: {}]   ;;  %s4267_s13 = inlined_call_operand.hbm [shape: bf16[128,256], index: 13, kind: input, shape index: {}]   ;;  %s4268_s14 = inlined_call_operand.vmem [shape: f32[1,256], index: 14, kind: input, shape index: {}]   ;;  %s4269_s15 = inlined_call_operand.hbm [shape: bf16[256,256], index: 15, kind: input, shape index: {}]   ;;  %s4270_s16 = inlined_call_operand.vmem [shape: f32[1,256], index: 16, kind: input, shape index: {}]   ;;  %s4271_s17 = inlined_call_operand.hbm [shape: bf16[256,128], index: 17, kind: input, shape index: {}]   ;;  %s4272_s18 = inlined_call_operand.vmem [shape: f32[1,128], index: 18, kind: input, shape index: {}]   ;;  %s4273_s19 = inlined_call_operand.hbm [shape: f32[128,128], index: 19, kind: output, shape index: {}]  }
   0x1   :  { %4284 = sst [smem:[#allocation27_spill]] %s4254_s0 }
   0x2   :  { %4285 = sst [smem:[#allocation28_spill]] %s4255_s1 }
   0x3   :  { %4286 = sst [smem:[#allocation29_spill]] %s4256_s2 }
   0x4   :  { %4287 = sst [smem:[#allocation30_spill]] %s4257_s3 }
   0x5   :  { %4288 = sst [smem:[#allocation31_spill]] %s4273_s19 }
   0x6   :  { %24 = vsyncpa [#allocation3], 0 }
   0x7   :  { %25 = vsyncpa [#allocation6], 0 }
   0x8   :  { %26 = vsyncpa [#allocation9], 0 }
   0x9   :  { %27 = vsyncpa [#allocation12], 0 }
   0xa   :  { %28 = vsyncpa [#allocation15], 0 }
   0xb   :  { %29 = vsyncpa [#allocation18], 0 }
   0xc   :  { %30 = vsyncpa [#allocation4], 0  ;;  %s3711_s0 = smov [#allocation5]   ;;  %s3712_s20 = smov [#allocation8]  }
   0xd   :  { %s48_s30 = sshll.u32 %s3711_s0, 4  ;;  %s76_s21 = sshll.u32 %s3712_s20, 4  ;;  %s49_s30 = int_to_ptr.vmem [resolvable:$true] %s48_s30  ;;  %s3827_s21 = int_to_ptr.vmem [resolvable:$true] %s76_s21 }
   0xe   :  { %s4289_s2 = sld [smem:[#allocation28_spill]] }
  0x14   :  { %s3455_s23 = scalar_lea.hbm %s4289_s2, 4096 }
  0x15   :  { %p3456_p0 = scmp.ne.s32.totalorder %s4289_s2, %s3455_s23  ;;  %p3459_p1 = scmp.lt.u32.totalorder %s3455_s23, %s4289_s2 }
  0x17   :  { %p3461_p2 = pnand %p3459_p1, %p3456_p0 }
  0x19   :  { %3464 = shalt.err (!%p3461_p2)
}
  0x1a   :  { %s3465_s27 = scalar_lea.vmem %s49_s30, 4096  ;;  %p3470_p4 = scmp.lt.s32.totalorder %s49_s30, %s49_s30 }
  0x1b   :  { %p3466_p3 = scmp.ne.s32.totalorder %s49_s30, %s3465_s27  ;;  %p3471_p5 = scmp.lt.s32.totalorder %s3465_s27, %s3465_s27 }
  0x1d   :  { %p3472_p6 = por %p3471_p5, %p3470_p4 }
  0x1f   :  { %p3473_p7 = pnand %p3472_p6, %p3466_p3 }
  0x21   :  { %3476 = shalt.err (!%p3473_p7)
}
  0x22   :  { %s4277_s28 = smov 128   ;;  %s4279_s29 = smov 8  }
  0x23   :  { %54 = dma.hbm_to_vmem [thread:$0]  %s4289_s2, 4096, %s49_s30, [#allocation6], %s4277_s28, %s4277_s28, %s4279_s29  }
  0x24   :  { %s3477_s23 = scalar_lea.hbm %s4259_s5, 2048 }
  0x25   :  { %p3478_p8 = scmp.ne.s32.totalorder %s4259_s5, %s3477_s23  ;;  %p3481_p9 = scmp.lt.u32.totalorder %s3477_s23, %s4259_s5 }
  0x27   :  { %p3483_p10 = pnand %p3481_p9, %p3478_p8 }
  0x29   :  { %3486 = shalt.err (!%p3483_p10)
}
  0x2a   :  { %s3487_s27 = scalar_lea.vmem %s3827_s21, 2048  ;;  %p3492_p12 = scmp.lt.s32.totalorder %s3827_s21, %s3827_s21 }
  0x2b   :  { %p3488_p11 = scmp.ne.s32.totalorder %s3827_s21, %s3487_s27  ;;  %p3493_p13 = scmp.lt.s32.totalorder %s3487_s27, %s3487_s27 }
  0x2d   :  { %p3494_p0 = por %p3493_p13, %p3492_p12 }
  0x2f   :  { %p3495_p1 = pnand %p3494_p0, %p3488_p11 }
  0x31   :  { %3498 = shalt.err (!%p3495_p1)
}
  0x32   :  { %s4282_s30 = smov 64   ;;  %s3716_s2 = smov 4  }
  0x33   :  { %82 = dma.hbm_to_vmem [thread:$0]  %s4259_s5, 2048, %s3827_s21, [#allocation9], %s4282_s30, %s4282_s30, %s3716_s2  }
  0x34   :  { %s3717_s1 = smov [#allocation11]   ;;  %s3718_s23 = smov [#allocation14]  }
  0x35   :  { %s104_s22 = sshll.u32 %s3717_s1, 4  ;;  %s132_s24 = sshll.u32 %s3718_s23, 4  ;;  %s105_s22 = int_to_ptr.vmem [resolvable:$true] %s104_s22  ;;  %s3864_s24 = int_to_ptr.vmem [resolvable:$true] %s132_s24 }
  0x36   :  { %s3499_s26 = scalar_lea.hbm %s4263_s9, 1024 }
  0x37   :  { %p3500_p2 = scmp.ne.s32.totalorder %s4263_s9, %s3499_s26  ;;  %p3503_p3 = scmp.lt.u32.totalorder %s3499_s26, %s4263_s9 }
  0x39   :  { %p3505_p4 = pnand %p3503_p3, %p3500_p2 }
  0x3b   :  { %3508 = shalt.err (!%p3505_p4)
}
  0x3c   :  { %s3509_s5 = scalar_lea.vmem %s105_s22, 1024  ;;  %p3514_p6 = scmp.lt.s32.totalorder %s105_s22, %s105_s22 }
  0x3d   :  { %p3510_p5 = scmp.ne.s32.totalorder %s105_s22, %s3509_s5  ;;  %p3515_p7 = scmp.lt.s32.totalorder %s3509_s5, %s3509_s5 }
  0x3f   :  { %p3516_p8 = por %p3515_p7, %p3514_p6 }
  0x41   :  { %p3517_p9 = pnand %p3516_p8, %p3510_p5 }
  0x43   :  { %3520 = shalt.err (!%p3517_p9)
}
  0x44   :  { %110 = dma.hbm_to_vmem [thread:$0]  %s4263_s9, 1024, %s105_s22, [#allocation12], %s4282_s30, %s4282_s30, %s3716_s2  }
  0x45   :  { %s3521_s19 = scalar_lea.hbm %s4267_s13, 2048 }
  0x46   :  { %p3522_p10 = scmp.ne.s32.totalorder %s4267_s13, %s3521_s19  ;;  %p3525_p11 = scmp.lt.u32.totalorder %s3521_s19, %s4267_s13 }
  0x48   :  { %p3527_p12 = pnand %p3525_p11, %p3522_p10 }
  0x4a   :  { %3530 = shalt.err (!%p3527_p12)
}
  0x4b   :  { %s3531_s3 = scalar_lea.vmem %s3864_s24, 2048  ;;  %p3536_p0 = scmp.lt.s32.totalorder %s3864_s24, %s3864_s24 }
  0x4c   :  { %p3532_p13 = scmp.ne.s32.totalorder %s3864_s24, %s3531_s3  ;;  %p3537_p1 = scmp.lt.s32.totalorder %s3531_s3, %s3531_s3 }
  0x4e   :  { %p3538_p2 = por %p3537_p1, %p3536_p0 }
  0x50   :  { %p3539_p3 = pnand %p3538_p2, %p3532_p13 }
  0x52   :  { %3542 = shalt.err (!%p3539_p3)
}
  0x53   :  { %s4290_s9 = smov 8   ;;  %s4291_s22 = smov 128  }
  0x54   :  { %138 = dma.hbm_to_vmem [thread:$0]  %s4267_s13, 2048, %s3864_s24, [#allocation15], %s4291_s22, %s4291_s22, %s4290_s9  }
  0x55   :  { %s3719_s5 = smov [#allocation2]   ;;  %s3720_s0 = smov [#allocation7]  }
  0x56   :  { %s36_s21 = sshll.u32 %s3719_s5, 4  ;;  %s62_s28 = sshll.u32 %s3720_s0, 4  ;;  %s37_s21 = int_to_ptr.vmem [resolvable:$true] %s36_s21  ;;  %s3901_s28 = int_to_ptr.vmem [resolvable:$true] %s62_s28 }
  0x57   :  { %s4292_s29 = sld [smem:[#allocation27_spill]] }
  0x5d   :  { %s3543_s1 = scalar_lea.hbm %s4292_s29, 2048 }
  0x5e   :  { %p3544_p4 = scmp.ne.s32.totalorder %s4292_s29, %s3543_s1  ;;  %p3547_p5 = scmp.lt.u32.totalorder %s3543_s1, %s4292_s29 }
  0x60   :  { %p3549_p6 = pnand %p3547_p5, %p3544_p4 }
  0x62   :  { %3552 = shalt.err (!%p3549_p6)
}
  0x63   :  { %s3553_s13 = scalar_lea.vmem %s37_s21, 2048  ;;  %p3558_p8 = scmp.lt.s32.totalorder %s37_s21, %s37_s21 }
  0x64   :  { %p3554_p7 = scmp.ne.s32.totalorder %s37_s21, %s3553_s13  ;;  %p3559_p9 = scmp.lt.s32.totalorder %s3553_s13, %s3553_s13 }
  0x66   :  { %p3560_p10 = por %p3559_p9, %p3558_p8 }
  0x68   :  { %p3561_p11 = pnand %p3560_p10, %p3554_p7 }
  0x6a   :  { %3564 = shalt.err (!%p3561_p11)
}
  0x6b   :  { %42 = dma.hbm_to_vmem [thread:$0]  %s4292_s29, 2048, %s37_s21, [#allocation3], %s4291_s22, %s4291_s22, %s4290_s9  }
  0x6c   :  { %s4293_s30 = sld [smem:[#allocation30_spill]] }
  0x72   :  { %s3565_s0 = scalar_lea.hbm %s4293_s30, 4096 }
  0x73   :  { %p3566_p12 = scmp.ne.s32.totalorder %s4293_s30, %s3565_s0  ;;  %p3569_p13 = scmp.lt.u32.totalorder %s3565_s0, %s4293_s30 }
  0x75   :  { %p3571_p0 = pnand %p3569_p13, %p3566_p12 }
  0x77   :  { %3574 = shalt.err (!%p3571_p0)
}
  0x78   :  { %s3575_s25 = scalar_lea.vmem %s3901_s28, 4096  ;;  %p3580_p2 = scmp.lt.s32.totalorder %s3901_s28, %s3901_s28 }
  0x79   :  { %p3576_p1 = scmp.ne.s32.totalorder %s3901_s28, %s3575_s25  ;;  %p3581_p3 = scmp.lt.s32.totalorder %s3575_s25, %s3575_s25 }
  0x7b   :  { %p3582_p4 = por %p3581_p3, %p3580_p2 }
  0x7d   :  { %p3583_p5 = pnand %p3582_p4, %p3576_p1 }
  0x7f   :  { %3586 = shalt.err (!%p3583_p5)
}
  0x80   :  { %68 = dma.hbm_to_vmem [thread:$0]  %s4293_s30, 4096, %s3901_s28, [#allocation6], %s4291_s22, %s4291_s22, %s4290_s9  }
  0x81   :  { %s3721_s3 = smov [#allocation10]   ;;  %s3722_s24 = smov [#allocation13]  }
  0x82   :  { %s90_s13 = sshll.u32 %s3721_s3, 4  ;;  %s118_s26 = sshll.u32 %s3722_s24, 4  ;;  %s91_s13 = int_to_ptr.vmem [resolvable:$true] %s90_s13  ;;  %s3938_s26 = int_to_ptr.vmem [resolvable:$true] %s118_s26 }
  0x83   :  { %s3587_s0 = scalar_lea.hbm %s4261_s7, 1024 }
  0x84   :  { %p3588_p6 = scmp.ne.s32.totalorder %s4261_s7, %s3587_s0  ;;  %p3591_p7 = scmp.lt.u32.totalorder %s3587_s0, %s4261_s7 }
  0x86   :  { %p3593_p8 = pnand %p3591_p7, %p3588_p6 }
  0x88   :  { %3596 = shalt.err (!%p3593_p8)
}
  0x89   :  { %s3597_s28 = scalar_lea.vmem %s91_s13, 1024  ;;  %p3602_p10 = scmp.lt.s32.totalorder %s91_s13, %s91_s13 }
  0x8a   :  { %p3598_p9 = scmp.ne.s32.totalorder %s91_s13, %s3597_s28  ;;  %p3603_p11 = scmp.lt.s32.totalorder %s3597_s28, %s3597_s28 }
  0x8c   :  { %p3604_p12 = por %p3603_p11, %p3602_p10 }
  0x8e   :  { %p3605_p13 = pnand %p3604_p12, %p3598_p9 }
  0x90   :  { %3608 = shalt.err (!%p3605_p13)
}
  0x91   :  { %s4294_s30 = smov 64   ;;  %s3609_s24 = scalar_lea.hbm %s4265_s11, 1024 }
  0x92   :  { %96 = dma.hbm_to_vmem [thread:$0]  %s4261_s7, 1024, %s91_s13, [#allocation9], %s4294_s30, %s4294_s30, %s3716_s2  }
  0x93   :  { %p3610_p0 = scmp.ne.s32.totalorder %s4265_s11, %s3609_s24  ;;  %p3613_p1 = scmp.lt.u32.totalorder %s3609_s24, %s4265_s11 }
  0x95   :  { %p3615_p2 = pnand %p3613_p1, %p3610_p0 }
  0x97   :  { %3618 = shalt.err (!%p3615_p2)
}
  0x98   :  { %s3619_s19 = scalar_lea.vmem %s3938_s26, 1024  ;;  %p3624_p4 = scmp.lt.s32.totalorder %s3938_s26, %s3938_s26 }
  0x99   :  { %p3620_p3 = scmp.ne.s32.totalorder %s3938_s26, %s3619_s19  ;;  %p3625_p5 = scmp.lt.s32.totalorder %s3619_s19, %s3619_s19 }
  0x9b   :  { %p3626_p6 = por %p3625_p5, %p3624_p4 }
  0x9d   :  { %p3627_p7 = pnand %p3626_p6, %p3620_p3 }
  0x9f   :  { %3630 = shalt.err (!%p3627_p7)
}
  0xa0   :  { %124 = dma.hbm_to_vmem [thread:$0]  %s4265_s11, 1024, %s3938_s26, [#allocation12], %s4294_s30, %s4294_s30, %s3716_s2  }
  0xa1   :  { %s3723_s1 = smov [#allocation16]   ;;  %s3724_s28 = smov [#allocation17]  }
  0xa2   :  { %s146_s23 = sshll.u32 %s3723_s1, 4  ;;  %s160_s25 = sshll.u32 %s3724_s28, 4  ;;  %s147_s23 = int_to_ptr.vmem [resolvable:$true] %s146_s23  ;;  %s3975_s25 = int_to_ptr.vmem [resolvable:$true] %s160_s25 }
  0xa3   :  { %s3631_s3 = scalar_lea.hbm %s4269_s15, 4096 }
  0xa4   :  { %p3632_p8 = scmp.ne.s32.totalorder %s4269_s15, %s3631_s3  ;;  %p3635_p9 = scmp.lt.u32.totalorder %s3631_s3, %s4269_s15 }
  0xa6   :  { %p3637_p10 = pnand %p3635_p9, %p3632_p8 }
  0xa8   :  { %3640 = shalt.err (!%p3637_p10)
}
  0xa9   :  { %s3641_s11 = scalar_lea.vmem %s147_s23, 4096  ;;  %p3646_p12 = scmp.lt.s32.totalorder %s147_s23, %s147_s23 }
  0xaa   :  { %p3642_p11 = scmp.ne.s32.totalorder %s147_s23, %s3641_s11  ;;  %p3647_p13 = scmp.lt.s32.totalorder %s3641_s11, %s3641_s11 }
  0xac   :  { %p3648_p0 = por %p3647_p13, %p3646_p12 }
  0xae   :  { %p3649_p1 = pnand %p3648_p0, %p3642_p11 }
  0xb0   :  { %3652 = shalt.err (!%p3649_p1)
}
  0xb1   :  { %152 = dma.hbm_to_vmem [thread:$0]  %s4269_s15, 4096, %s147_s23, [#allocation15], %s4291_s22, %s4291_s22, %s4290_s9  }
  0xb2   :  { %s3653_s13 = scalar_lea.hbm %s4271_s17, 2048 }
  0xb3   :  { %p3654_p2 = scmp.ne.s32.totalorder %s4271_s17, %s3653_s13  ;;  %p3657_p3 = scmp.lt.u32.totalorder %s3653_s13, %s4271_s17 }
  0xb5   :  { %p3659_p4 = pnand %p3657_p3, %p3654_p2 }
  0xb7   :  { %3662 = shalt.err (!%p3659_p4)
}
  0xb8   :  { %s3663_s3 = scalar_lea.vmem %s3975_s25, 2048  ;;  %p3668_p6 = scmp.lt.s32.totalorder %s3975_s25, %s3975_s25 }
  0xb9   :  { %p3664_p5 = scmp.ne.s32.totalorder %s3975_s25, %s3663_s3  ;;  %p3669_p7 = scmp.lt.s32.totalorder %s3663_s3, %s3663_s3 }
  0xbb   :  { %p3670_p8 = por %p3669_p7, %p3668_p6 }
  0xbd   :  { %p3671_p9 = pnand %p3670_p8, %p3664_p5 }
  0xbf   :  { %3674 = shalt.err (!%p3671_p9)
}
  0xc0   :  { %166 = dma.hbm_to_vmem [thread:$0]  %s4271_s17, 2048, %s3975_s25, [#allocation18], %s4294_s30, %s4294_s30, %s3716_s2  }
  0xc1   :  { %3697 = dma.done.wait [#allocation3], 2048  }
  0xc2   :  { %3698 = vsyncadd [#allocation3], 4294965248 }
  0xc3   :  { %3699 = dma.done.wait [#allocation6], 8192  }
  0xc4   :  { %3700 = vsyncadd [#allocation6], 4294959104 }
  0xc5   :  { %3701 = dma.done.wait [#allocation9], 3072  }
  0xc6   :  { %3702 = vsyncadd [#allocation9], 4294964224 }
  0xc7   :  { %3703 = dma.done.wait [#allocation12], 2048  }
  0xc8   :  { %3704 = vsyncadd [#allocation12], 4294965248 }
  0xc9   :  { %3705 = dma.done.wait [#allocation15], 6144  }
  0xca   :  { %3706 = vsyncadd [#allocation15], 4294961152 }
  0xcb   :  { %3707 = dma.done.wait [#allocation18], 2048  }
  0xcc   :  { %3708 = vsyncadd [#allocation18], 4294965248  ;;  %v3207_v0 = vld [vmem:[#allocation5 + $0x4] ss:$8 sps:$4 sm:$0xff]   ;;  %v3209_v1 = vld [vmem:[#allocation5] ss:$8 sps:$4 sm:$0xff]  }
  0xcd   :  { %500 = vmatprep.subr.bf16.mxu0 %v3207_v0  ;;  %v3210_v2 = vld [vmem:[#allocation5 + $0x14] ss:$8 sps:$4 sm:$0xff]   ;;  %v3212_v3 = vld [vmem:[#allocation5 + $0x10] ss:$8 sps:$4 sm:$0xff]   ;;  %v3213_v4 = vld [vmem:[#allocation5 + $0x24] ss:$8 sps:$4 sm:$0xff]  }
  0xce   :  { %501 = vmatpush1.bf16.msra.mxu0 %v3209_v1  ;;  %v3215_v5 = vld [vmem:[#allocation5 + $0x20] ss:$8 sps:$4 sm:$0xff]   ;;  %v3216_v6 = vld [vmem:[#allocation5 + $0x34] ss:$8 sps:$4 sm:$0xff]   ;;  %v3218_v7 = vld [vmem:[#allocation5 + $0x30] ss:$8 sps:$4 sm:$0xff]  }
  0xcf   :  { %502 = vmatprep.subr.bf16.mxu0 %v3210_v2  ;;  %v3219_v8 = vld [vmem:[#allocation5 + $0x44] ss:$8 sps:$4 sm:$0xff]   ;;  %v3221_v9 = vld [vmem:[#allocation5 + $0x40] ss:$8 sps:$4 sm:$0xff]   ;;  %v3222_v10 = vld [vmem:[#allocation5 + $0x54] ss:$8 sps:$4 sm:$0xff]  }
  0xd0   :  { %v3224_v11 = vld [vmem:[#allocation5 + $0x50] ss:$8 sps:$4 sm:$0xff]   ;;  %v3225_v12 = vld [vmem:[#allocation5 + $0x64] ss:$8 sps:$4 sm:$0xff]   ;;  %v3227_v14 = vld [vmem:[#allocation5 + $0x60] ss:$8 sps:$4 sm:$0xff]  }
  0xd1   :  { %v3257_v13 = vld [vmem:[#allocation2 + $0x4] ss:$8 sps:$4 sm:$0xff]   ;;  %v3228_v15 = vld [vmem:[#allocation5 + $0x74] ss:$8 sps:$4 sm:$0xff]   ;;  %v3230_v16 = vld [vmem:[#allocation5 + $0x70] ss:$8 sps:$4 sm:$0xff]  }
  0xd2   :  { %503 = vmatpush1.bf16.msra.mxu0 %v3212_v3  ;;  %532 = vmatprep.mubr.bf16.mxu0 %v3257_v13  ;;  %v3231_v17 = vld [vmem:[#allocation5 + $0x84] ss:$8 sps:$4 sm:$0xff]   ;;  %v3233_v18 = vld [vmem:[#allocation5 + $0x80] ss:$8 sps:$4 sm:$0xff]   ;;  %v3234_v19 = vld [vmem:[#allocation5 + $0x94] ss:$8 sps:$4 sm:$0xff]  }
  0xd3   :  { %504 = vmatprep.subr.bf16.mxu0 %v3213_v4  ;;  %v3279_v20 = vld [vmem:[#allocation7 + $0x4] ss:$8 sps:$4 sm:$0xff]   ;;  %v3281_v21 = vld [vmem:[#allocation7] ss:$8 sps:$4 sm:$0xff]   ;;  %v3236_v22 = vld [vmem:[#allocation5 + $0x90] ss:$8 sps:$4 sm:$0xff]  }
  0xd4   :  { %865 = vmatprep.subr.bf16.mxu1 %v3279_v20  ;;  %v3282_v23 = vld [vmem:[#allocation7 + $0x14] ss:$8 sps:$4 sm:$0xff]   ;;  %v3237_v24 = vld [vmem:[#allocation5 + $0xa4] ss:$8 sps:$4 sm:$0xff]   ;;  %v3284_v25 = vld [vmem:[#allocation7 + $0x10] ss:$8 sps:$4 sm:$0xff]  }
  0xd5   :  { %866 = vmatpush1.bf16.msra.mxu1 %v3281_v21  ;;  %v3285_v26 = vld [vmem:[#allocation7 + $0x24] ss:$8 sps:$4 sm:$0xff]   ;;  %v3239_v27 = vld [vmem:[#allocation5 + $0xa0] ss:$8 sps:$4 sm:$0xff]   ;;  %v3240_v28 = vld [vmem:[#allocation5 + $0xb4] ss:$8 sps:$4 sm:$0xff]  }
  0xd6   :  { %505 = vmatpush1.bf16.msra.mxu0 %v3215_v5  ;;  %867 = vmatprep.subr.bf16.mxu1 %v3282_v23  ;;  %v3287_v29 = vld [vmem:[#allocation7 + $0x20] ss:$8 sps:$4 sm:$0xff]   ;;  %v3288_v30 = vld [vmem:[#allocation7 + $0x34] ss:$8 sps:$4 sm:$0xff]   ;;  %v3242_v31 = vld [vmem:[#allocation5 + $0xb0] ss:$8 sps:$4 sm:$0xff]  }
  0xd7   :  { %506 = vmatprep.subr.bf16.mxu0 %v3216_v6  ;;  %v3243_v32 = vld [vmem:[#allocation5 + $0xc4] ss:$8 sps:$4 sm:$0xff]   ;;  %v3290_v33 = vld [vmem:[#allocation7 + $0x30] ss:$8 sps:$4 sm:$0xff]   ;;  %v3245_v35 = vld [vmem:[#allocation5 + $0xc0] ss:$8 sps:$4 sm:$0xff]  }
  0xd8   :  { %v3291_v34 = vld [vmem:[#allocation7 + $0x44] ss:$8 sps:$4 sm:$0xff]   ;;  %v3246_v36 = vld [vmem:[#allocation5 + $0xd4] ss:$8 sps:$4 sm:$0xff]   ;;  %v3293_v37 = vld [vmem:[#allocation7 + $0x40] ss:$8 sps:$4 sm:$0xff]  }
  0xd9   :  { %868 = vmatpush1.bf16.msra.mxu1 %v3284_v25  ;;  %v3294_v38 = vld [vmem:[#allocation7 + $0x54] ss:$8 sps:$4 sm:$0xff]   ;;  %v3248_v39 = vld [vmem:[#allocation5 + $0xd0] ss:$8 sps:$4 sm:$0xff]   ;;  %v3249_v40 = vld [vmem:[#allocation5 + $0xe4] ss:$8 sps:$4 sm:$0xff]  }
  0xda   :  { %507 = vmatpush1.bf16.msra.mxu0 %v3218_v7  ;;  %869 = vmatprep.subr.bf16.mxu1 %v3285_v26  ;;  %v3296_v41 = vld [vmem:[#allocation7 + $0x50] ss:$8 sps:$4 sm:$0xff]   ;;  %v3297_v42 = vld [vmem:[#allocation7 + $0x64] ss:$8 sps:$4 sm:$0xff]   ;;  %v3251_v43 = vld [vmem:[#allocation5 + $0xe0] ss:$8 sps:$4 sm:$0xff]  }
  0xdb   :  { %508 = vmatprep.subr.bf16.mxu0 %v3219_v8  ;;  %v3299_v44 = vld [vmem:[#allocation7 + $0x60] ss:$8 sps:$4 sm:$0xff]   ;;  %v3252_v45 = vld [vmem:[#allocation5 + $0xf4] ss:$8 sps:$4 sm:$0xff]   ;;  %v3254_v47 = vld [vmem:[#allocation5 + $0xf0] ss:$8 sps:$4 sm:$0xff]  }
  0xdc   :  { %v3300_v46 = vld [vmem:[#allocation7 + $0x74] ss:$8 sps:$4 sm:$0xff]   ;;  %v3302_v48 = vld [vmem:[#allocation7 + $0x70] ss:$8 sps:$4 sm:$0xff]   ;;  %v3303_v49 = vld [vmem:[#allocation7 + $0x84] ss:$8 sps:$4 sm:$0xff]  }
  0xdd   :  { %870 = vmatpush1.bf16.msra.mxu1 %v3287_v29  ;;  %v3255_v50 = vld [vmem:[#allocation2] ss:$8 sps:$4 sm:$0xff]   ;;  %v3258_v51 = vld [vmem:[#allocation2 + $0x14] ss:$8 sps:$4 sm:$0xff]   ;;  %v3308_v54 = vld [vmem:[#allocation7 + $0x90] ss:$8 sps:$4 sm:$0xff]  }
  0xde   :  { %509 = vmatpush1.bf16.msra.mxu0 %v3221_v9  ;;  %871 = vmatprep.subr.bf16.mxu1 %v3288_v30  ;;  %v3305_v52 = vld [vmem:[#allocation7 + $0x80] ss:$8 sps:$4 sm:$0xff]   ;;  %v3306_v53 = vld [vmem:[#allocation7 + $0x94] ss:$8 sps:$4 sm:$0xff]   ;;  %v3309_v55 = vld [vmem:[#allocation7 + $0xa4] ss:$8 sps:$4 sm:$0xff]   ;;  %v250_v30 = vlaneseq }
  0xdf   :  { %510 = vmatprep.subr.bf16.mxu0 %v3222_v10  ;;  %v3260_v56 = vld [vmem:[#allocation2 + $0x10] ss:$8 sps:$4 sm:$0xff]   ;;  %v3261_v57 = vld [vmem:[#allocation2 + $0x24] ss:$8 sps:$4 sm:$0xff]   ;;  %v3311_v58 = vld [vmem:[#allocation7 + $0xa0] ss:$8 sps:$4 sm:$0xff]  }
  0xe0   :  { %v3312_v59 = vld [vmem:[#allocation7 + $0xb4] ss:$8 sps:$4 sm:$0xff]   ;;  %v3314_v60 = vld [vmem:[#allocation7 + $0xb0] ss:$8 sps:$4 sm:$0xff]   ;;  %v3315_v61 = vld [vmem:[#allocation7 + $0xc4] ss:$8 sps:$4 sm:$0xff]  }
  0xe1   :  { %872 = vmatpush1.bf16.msra.mxu1 %v3290_v33  ;;  %v3263_v62 = vld [vmem:[#allocation2 + $0x20] ss:$8 sps:$4 sm:$0xff]   ;;  %v3264_v63 = vld [vmem:[#allocation2 + $0x34] ss:$8 sps:$4 sm:$0xff]   ;;  %v3266_v2 = vld [vmem:[#allocation2 + $0x30] ss:$8 sps:$4 sm:$0xff]  }
  0xe2   :  { %511 = vmatpush1.bf16.msra.mxu0 %v3224_v11  ;;  %873 = vmatprep.subr.bf16.mxu1 %v3291_v34  ;;  %v3317_v0 = vld [vmem:[#allocation7 + $0xc0] ss:$8 sps:$4 sm:$0xff]   ;;  %v3318_v1 = vld [vmem:[#allocation7 + $0xd4] ss:$8 sps:$4 sm:$0xff]   ;;  %v3267_v3 = vld [vmem:[#allocation2 + $0x44] ss:$8 sps:$4 sm:$0xff]  }
  0xe3   :  { %512 = vmatprep.subr.bf16.mxu0 %v3225_v12  ;;  %v3269_v4 = vld [vmem:[#allocation2 + $0x40] ss:$8 sps:$4 sm:$0xff]   ;;  %v3270_v5 = vld [vmem:[#allocation2 + $0x54] ss:$8 sps:$4 sm:$0xff]   ;;  %v3272_v6 = vld [vmem:[#allocation2 + $0x50] ss:$8 sps:$4 sm:$0xff]  }
  0xe4   :  { %v3273_v7 = vld [vmem:[#allocation2 + $0x64] ss:$8 sps:$4 sm:$0xff]   ;;  %v3275_v8 = vld [vmem:[#allocation2 + $0x60] ss:$8 sps:$4 sm:$0xff]   ;;  %v3276_v9 = vld [vmem:[#allocation2 + $0x74] ss:$8 sps:$4 sm:$0xff]  }
  0xe5   :  { %874 = vmatpush1.bf16.msra.mxu1 %v3293_v37  ;;  %v3278_v10 = vld [vmem:[#allocation2 + $0x70] ss:$8 sps:$4 sm:$0xff]   ;;  %v3321_v12 = vld [vmem:[#allocation7 + $0xe4] ss:$8 sps:$4 sm:$0xff]   ;;  %v3323_v13 = vld [vmem:[#allocation7 + $0xe0] ss:$8 sps:$4 sm:$0xff]  }
  0xe6   :  { %513 = vmatpush1.bf16.msra.mxu0 %v3227_v14  ;;  %875 = vmatprep.subr.bf16.mxu1 %v3294_v38  ;;  %v3320_v11 = vld [vmem:[#allocation7 + $0xd0] ss:$8 sps:$4 sm:$0xff]   ;;  %v3324_v14 = vld [vmem:[#allocation7 + $0xf4] ss:$8 sps:$4 sm:$0xff]   ;;  %v3336_v25 = vld [vmem:[#allocation8 + $0x20] sm:$0xff]   ;;  %s4295_s30 = sld [smem:[#allocation29_spill]] }
  0xe7   :  { %514 = vmatprep.subr.bf16.mxu0 %v3228_v15  ;;  %v3326_v15 = vld [vmem:[#allocation7 + $0xf0] ss:$8 sps:$4 sm:$0xff]   ;;  %v3337_v26 = vld [vmem:[#allocation8 + $0x68] sm:$0xff]  }
  0xe8   :  { %v3331_v20 = vld [vmem:[#allocation8 + $0x50] sm:$0xff]   ;;  %v3334_v23 = vld [vmem:[#allocation8 + $0x18] sm:$0xff]  }
  0xe9   :  { %876 = vmatpush1.bf16.msra.mxu1 %v3296_v41  ;;  %v3332_v21 = vld [vmem:[#allocation8 + $0x10] sm:$0xff]  }
  0xea   :  { %515 = vmatpush1.bf16.msra.mxu0 %v3230_v16  ;;  %877 = vmatprep.subr.bf16.mxu1 %v3297_v42  ;;  %v3327_v16 = vld [vmem:[#allocation8 + $0x40] sm:$0xff]   ;;  %v3340_v29 = vld [vmem:[#allocation8 + $0x30] sm:$0xff]  }
  0xeb   :  { %516 = vmatprep.subr.bf16.mxu0 %v3231_v17  ;;  %v3328_v17 = vld [vmem:[#allocation8] sm:$0xff]  }
  0xec   :  { %v248_v33 = vld [vmem:[%s4295_s30] sm:$0x3] }
  0xed   :  { %878 = vmatpush1.bf16.msra.mxu1 %v3299_v44 }
  0xee   :  { %517 = vmatpush1.bf16.msra.mxu0 %v3233_v18  ;;  %879 = vmatprep.subr.bf16.mxu1 %v3300_v46  ;;  %v3329_v18 = vld [vmem:[#allocation8 + $0x48] sm:$0xff]  }
  0xef   :  { %518 = vmatprep.subr.bf16.mxu0 %v3234_v19  ;;  %v3330_v19 = vld [vmem:[#allocation8 + $0x8] sm:$0xff]  }
  0xf1   :  { %880 = vmatpush1.bf16.msra.mxu1 %v3302_v48 }
  0xf2   :  { %519 = vmatpush1.bf16.msra.mxu0 %v3236_v22  ;;  %881 = vmatprep.subr.bf16.mxu1 %v3303_v49  ;;  %v3333_v22 = vld [vmem:[#allocation8 + $0x58] sm:$0xff]  }
  0xf3   :  { %520 = vmatprep.subr.bf16.mxu0 %v3237_v24  ;;  %v3335_v24 = vld [vmem:[#allocation8 + $0x60] sm:$0xff]  }
  0xf5   :  { %882 = vmatpush1.bf16.msra.mxu1 %v3305_v52 }
  0xf6   :  { %521 = vmatpush1.bf16.msra.mxu0 %v3239_v27  ;;  %883 = vmatprep.subr.bf16.mxu1 %v3306_v53  ;;  %v3338_v27 = vld [vmem:[#allocation8 + $0x28] sm:$0xff]  }
  0xf7   :  { %522 = vmatprep.subr.bf16.mxu0 %v3240_v28  ;;  %v3339_v28 = vld [vmem:[#allocation8 + $0x70] sm:$0xff]  }
  0xf9   :  { %884 = vmatpush1.bf16.msra.mxu1 %v3308_v54 }
  0xfa   :  { %523 = vmatpush1.bf16.msra.mxu0 %v3242_v31  ;;  %885 = vmatprep.subr.bf16.mxu1 %v3309_v55  ;;  %v251_v31 = vshrl.u32 %v250_v30, 7 }
  0xfb   :  { %524 = vmatprep.subr.bf16.mxu0 %v3243_v32 }
  0xfc   :  { %v4012_v32 = vsub.s32 0, %v251_v31  ;;  %v4017_v34 = vsub.s32 1, %v251_v31 }
  0xfd   :  { %886 = vmatpush1.bf16.msra.mxu1 %v3311_v58 }
  0xfe   :  { %525 = vmatpush1.bf16.msra.mxu0 %v3245_v35  ;;  %887 = vmatprep.subr.bf16.mxu1 %v3312_v59  ;;  %v4020_v35 = vrot.slane %v248_v33, %v4012_v32 }
  0xff   :  { %526 = vmatprep.subr.bf16.mxu0 %v3246_v36  ;;  %v4023_v36 = vrot.slane %v248_v33, %v4017_v34 }
 0x101   :  { %888 = vmatpush1.bf16.msra.mxu1 %v3314_v60 }
 0x102   :  { %527 = vmatpush1.bf16.msra.mxu0 %v3248_v39  ;;  %889 = vmatprep.subr.bf16.mxu1 %v3315_v61 }
 0x103   :  { %528 = vmatprep.subr.bf16.mxu0 %v3249_v40 }
 0x105   :  { %890 = vmatpush1.bf16.msra.mxu1 %v3317_v0 }
 0x106   :  { %529 = vmatpush1.bf16.msra.mxu0 %v3251_v43  ;;  %891 = vmatprep.subr.bf16.mxu1 %v3318_v1 }
 0x107   :  { %530 = vmatprep.subr.bf16.mxu0 %v3252_v45 }
 0x109   :  { %892 = vmatpush1.bf16.msra.mxu1 %v3320_v11 }
 0x10a   :  { %531 = vmatpush1.bf16.msra.mxu0 %v3254_v47  ;;  %893 = vmatprep.subr.bf16.mxu1 %v3321_v12 }
 0x10b   :  { %2919 = vmatprep.subr.bf16.mxu0 %v3327_v16 }
 0x10d   :  { %533 = vmatmul.mubr.bf16.vlgmr.msra.gmra.mrb[0].mxu0 %v3255_v50  ;;  %894 = vmatpush1.bf16.msra.mxu1 %v3323_v13 }
 0x10e   :  { %542 = vmatprep.mubr.bf16.mxu0 %v3258_v51  ;;  %895 = vmatprep.subr.bf16.mxu1 %v3324_v14 }
 0x10f   :  { %2920 = vmatpush3.bf16.msra.mxu0 %v3328_v17 }
 0x110   :  { %2921 = vmatprep.subr.bf16.mxu0 %v3329_v18 }
 0x111   :  { %896 = vmatpush1.bf16.msra.mxu1 %v3326_v15 }
 0x113   :  { %2922 = vmatpush3.bf16.msra.mxu0 %v3330_v19 }
 0x114   :  { %2923 = vmatprep.subr.bf16.mxu0 %v3331_v20 }
 0x115   :  { %543 = vmatmul.mubr.bf16.gmra.mrb[4].mxu0 %v3260_v56 }
 0x116   :  { %552 = vmatprep.mubr.bf16.mxu0 %v3261_v57 }
 0x117   :  { %2924 = vmatpush3.bf16.msra.mxu0 %v3332_v21 }
 0x118   :  { %2925 = vmatprep.subr.bf16.mxu0 %v3333_v22 }
 0x11b   :  { %2926 = vmatpush3.bf16.msra.mxu0 %v3334_v23 }
 0x11c   :  { %2927 = vmatprep.subr.bf16.mxu0 %v3335_v24 }
 0x11d   :  { %553 = vmatmul.mubr.bf16.gmra.mrb[8].mxu0 %v3263_v62 }
 0x11e   :  { %562 = vmatprep.mubr.bf16.mxu0 %v3264_v63 }
 0x11f   :  { %2928 = vmatpush3.bf16.msra.mxu0 %v3336_v25 }
 0x120   :  { %2929 = vmatprep.subr.bf16.mxu0 %v3337_v26 }
 0x123   :  { %2930 = vmatpush3.bf16.msra.mxu0 %v3338_v27 }
 0x124   :  { %2931 = vmatprep.subr.bf16.mxu0 %v3339_v28 }
 0x125   :  { %563 = vmatmul.mubr.bf16.gmra.mrb[12].mxu0 %v3266_v2 }
 0x126   :  { %572 = vmatprep.mubr.bf16.mxu0 %v3267_v3 }
 0x127   :  { %2932 = vmatpush3.bf16.msra.mxu0 %v3340_v29 }
 0x12d   :  { %573 = vmatmul.mubr.bf16.gmra.mrb[16].mxu0 %v3269_v4 }
 0x12e   :  { %582 = vmatprep.mubr.bf16.mxu0 %v3270_v5 }
 0x135   :  { %583 = vmatmul.mubr.bf16.gmra.mrb[20].mxu0 %v3272_v6 }
 0x136   :  { %592 = vmatprep.mubr.bf16.mxu0 %v3273_v7 }
 0x13d   :  { %593 = vmatmul.mubr.bf16.gmra.mrb[24].mxu0 %v3275_v8 }
 0x13e   :  { %602 = vmatprep.mubr.bf16.mxu0 %v3276_v9 }
 0x145   :  { %603 = vmatmul.mubr.bf16.gmra.mrb[28].mxu0 %v3278_v10 }
 0x1e0   :  { %v534_v37 = vpop.f32.mrb[0].mxu0 }
 0x1e1   :  { %v535_v38 = vadd.f32 %v534_v37, %v4020_v35  ;;  %v536_v39 = vpop.f32.mrb[1].mxu0 }
 0x1e2   :  { %v537_v40 = vadd.f32 %v536_v39, %v4023_v36  ;;  %v538_v41 = vpop.f32.mrb[2].mxu0 }
 0x1e3   :  { %v539_v42 = vadd.f32 %v538_v41, %v4020_v35  ;;  %v540_v43 = vpop.f32.mrb[3].mxu0  ;;  %v613_v45 = vmax.f32 %v535_v38, 0.0 }
 0x1e4   :  { %v541_v44 = vadd.f32 %v540_v43, %v4023_v36  ;;  %v614_v47 = vmax.f32 %v537_v40, 0.0 }
 0x1e5   :  { %v615_v46 = vmax.f32 %v539_v42, 0.0 }
 0x1e6   :  { %v616_v48 = vmax.f32 %v541_v44, 0.0 }
 0x1e7   :  { %v645_v49 = vpack.c.bf16 %v615_v46, %v613_v45 }
 0x1e8   :  { %v544_v50 = vpop.f32.mrb[4].mxu0  ;;  %v646_v51 = vpack.c.bf16 %v616_v48, %v614_v47 }
 0x1e9   :  { %v545_v52 = vadd.f32 %v544_v50, %v4020_v35  ;;  %v546_v53 = vpop.f32.mrb[5].mxu0 }
 0x1ea   :  { %v547_v54 = vadd.f32 %v546_v53, %v4023_v36  ;;  %v548_v55 = vpop.f32.mrb[6].mxu0  ;;  %897 = vmatprep.mubr.bf16.mxu1 %v646_v51 }
 0x1eb   :  { %v549_v56 = vadd.f32 %v548_v55, %v4020_v35  ;;  %v550_v57 = vpop.f32.mrb[7].mxu0  ;;  %898 = vmatmul.mubr.bf16.vlgmr.msra.gmra.mrb[0].mxu1 %v645_v49  ;;  %v617_v59 = vmax.f32 %v545_v52, 0.0 }
 0x1ec   :  { %v551_v58 = vadd.f32 %v550_v57, %v4023_v36  ;;  %v618_v61 = vmax.f32 %v547_v54, 0.0 }
 0x1ed   :  { %v619_v60 = vmax.f32 %v549_v56, 0.0 }
 0x1ee   :  { %v620_v62 = vmax.f32 %v551_v58, 0.0 }
 0x1ef   :  { %v647_v63 = vpack.c.bf16 %v619_v60, %v617_v59 }
 0x1f0   :  { %v648_v0 = vpack.c.bf16 %v620_v62, %v618_v61  ;;  %v554_v1 = vpop.f32.mrb[8].mxu0 }
 0x1f1   :  { %v555_v2 = vadd.f32 %v554_v1, %v4020_v35  ;;  %v556_v3 = vpop.f32.mrb[9].mxu0 }
 0x1f2   :  { %v557_v4 = vadd.f32 %v556_v3, %v4023_v36  ;;  %v558_v5 = vpop.f32.mrb[10].mxu0  ;;  %907 = vmatprep.mubr.bf16.mxu1 %v648_v0 }
 0x1f3   :  { %v559_v6 = vadd.f32 %v558_v5, %v4020_v35  ;;  %v560_v7 = vpop.f32.mrb[11].mxu0  ;;  %908 = vmatmul.mubr.bf16.gmra.mrb[4].mxu1 %v647_v63  ;;  %v621_v9 = vmax.f32 %v555_v2, 0.0 }
 0x1f4   :  { %v561_v8 = vadd.f32 %v560_v7, %v4023_v36  ;;  %v622_v11 = vmax.f32 %v557_v4, 0.0 }
 0x1f5   :  { %v623_v10 = vmax.f32 %v559_v6, 0.0 }
 0x1f6   :  { %v624_v12 = vmax.f32 %v561_v8, 0.0 }
 0x1f7   :  { %v649_v13 = vpack.c.bf16 %v623_v10, %v621_v9 }
 0x1f8   :  { %v650_v14 = vpack.c.bf16 %v624_v12, %v622_v11  ;;  %v564_v15 = vpop.f32.mrb[12].mxu0 }
 0x1f9   :  { %v565_v16 = vadd.f32 %v564_v15, %v4020_v35  ;;  %v566_v17 = vpop.f32.mrb[13].mxu0 }
 0x1fa   :  { %v567_v18 = vadd.f32 %v566_v17, %v4023_v36  ;;  %v568_v19 = vpop.f32.mrb[14].mxu0  ;;  %917 = vmatprep.mubr.bf16.mxu1 %v650_v14 }
 0x1fb   :  { %v569_v20 = vadd.f32 %v568_v19, %v4020_v35  ;;  %v570_v21 = vpop.f32.mrb[15].mxu0  ;;  %918 = vmatmul.mubr.bf16.gmra.mrb[8].mxu1 %v649_v13  ;;  %v625_v23 = vmax.f32 %v565_v16, 0.0 }
 0x1fc   :  { %v571_v22 = vadd.f32 %v570_v21, %v4023_v36  ;;  %v626_v25 = vmax.f32 %v567_v18, 0.0 }
 0x1fd   :  { %v627_v24 = vmax.f32 %v569_v20, 0.0 }
 0x1fe   :  { %v628_v26 = vmax.f32 %v571_v22, 0.0 }
 0x1ff   :  { %v651_v27 = vpack.c.bf16 %v627_v24, %v625_v23 }
 0x200   :  { %v652_v28 = vpack.c.bf16 %v628_v26, %v626_v25  ;;  %v574_v29 = vpop.f32.mrb[16].mxu0  ;;  %v3341_v25 = vld [vmem:[#allocation8 + $0x78] sm:$0xff]  }
 0x201   :  { %v575_v30 = vadd.f32 %v574_v29, %v4020_v35  ;;  %v576_v31 = vpop.f32.mrb[17].mxu0  ;;  %v3342_v26 = vld [vmem:[#allocation8 + $0x38] sm:$0xff]   ;;  %2933 = vmatprep.subr.bf16.mxu0 %v3341_v25  ;;  %v3347_v29 = vld [vmem:[#allocation10 + $0x20] sm:$0xff]  }
 0x202   :  { %v577_v33 = vadd.f32 %v576_v31, %v4023_v36  ;;  %v578_v37 = vpop.f32.mrb[18].mxu0  ;;  %927 = vmatprep.mubr.bf16.mxu1 %v652_v28  ;;  %2934 = vmatpush3.bf16.msra.mxu0 %v3342_v26  ;;  %v3344_v28 = vld [vmem:[#allocation10 + $0x8] sm:$0xff]   ;;  %v693_v31 = vld [vmem:[%s4258_s4] sm:$0x3] }
 0x203   :  { %v579_v38 = vadd.f32 %v578_v37, %v4020_v35  ;;  %v580_v39 = vpop.f32.mrb[19].mxu0  ;;  %928 = vmatmul.mubr.bf16.gmra.mrb[12].mxu1 %v651_v27  ;;  %v629_v41 = vmax.f32 %v575_v30, 0.0  ;;  %v3343_v27 = vld [vmem:[#allocation10] sm:$0xff]   ;;  %v3348_v30 = vld [vmem:[#allocation10 + $0x28] sm:$0xff]   ;;  %v4064_v37 = vrot.slane %v693_v31, %v4017_v34 }
 0x204   :  { %v581_v40 = vadd.f32 %v580_v39, %v4023_v36  ;;  %v630_v43 = vmax.f32 %v577_v33, 0.0  ;;  %3095 = vmatprep.subr.bf16.mxu1 %v3343_v27  ;;  %v4061_v33 = vrot.slane %v693_v31, %v4012_v32 }
 0x205   :  { %v631_v42 = vmax.f32 %v579_v38, 0.0  ;;  %3096 = vmatpush3.bf16.msra.mxu1 %v3343_v27 }
 0x206   :  { %v632_v44 = vmax.f32 %v581_v40, 0.0  ;;  %3097 = vmatprep.subr.bf16.mxu1 %v3344_v28 }
 0x207   :  { %v653_v45 = vpack.c.bf16 %v631_v42, %v629_v41 }
 0x208   :  { %v654_v46 = vpack.c.bf16 %v632_v44, %v630_v43  ;;  %v584_v47 = vpop.f32.mrb[20].mxu0 }
 0x209   :  { %v585_v48 = vadd.f32 %v584_v47, %v4020_v35  ;;  %v586_v49 = vpop.f32.mrb[21].mxu0  ;;  %3098 = vmatpush3.bf16.msra.mxu1 %v3344_v28 }
 0x20a   :  { %v587_v50 = vadd.f32 %v586_v49, %v4023_v36  ;;  %v588_v51 = vpop.f32.mrb[22].mxu0  ;;  %937 = vmatprep.mubr.bf16.mxu1 %v654_v46 }
 0x20b   :  { %v589_v52 = vadd.f32 %v588_v51, %v4020_v35  ;;  %v590_v53 = vpop.f32.mrb[23].mxu0  ;;  %938 = vmatmul.mubr.bf16.gmra.mrb[16].mxu1 %v653_v45  ;;  %v633_v55 = vmax.f32 %v585_v48, 0.0 }
 0x20c   :  { %v591_v54 = vadd.f32 %v590_v53, %v4023_v36  ;;  %v634_v57 = vmax.f32 %v587_v50, 0.0 }
 0x20d   :  { %v635_v56 = vmax.f32 %v589_v52, 0.0 }
 0x20e   :  { %v636_v58 = vmax.f32 %v591_v54, 0.0 }
 0x20f   :  { %v655_v59 = vpack.c.bf16 %v635_v56, %v633_v55 }
 0x210   :  { %v656_v60 = vpack.c.bf16 %v636_v58, %v634_v57  ;;  %v594_v61 = vpop.f32.mrb[24].mxu0 }
 0x211   :  { %v595_v62 = vadd.f32 %v594_v61, %v4020_v35  ;;  %v596_v63 = vpop.f32.mrb[25].mxu0 }
 0x212   :  { %v597_v0 = vadd.f32 %v596_v63, %v4023_v36  ;;  %v598_v1 = vpop.f32.mrb[26].mxu0  ;;  %947 = vmatprep.mubr.bf16.mxu1 %v656_v60 }
 0x213   :  { %v599_v2 = vadd.f32 %v598_v1, %v4020_v35  ;;  %v600_v3 = vpop.f32.mrb[27].mxu0  ;;  %948 = vmatmul.mubr.bf16.gmra.mrb[20].mxu1 %v655_v59  ;;  %v637_v5 = vmax.f32 %v595_v62, 0.0 }
 0x214   :  { %v601_v4 = vadd.f32 %v600_v3, %v4023_v36  ;;  %v638_v7 = vmax.f32 %v597_v0, 0.0 }
 0x215   :  { %v639_v6 = vmax.f32 %v599_v2, 0.0 }
 0x216   :  { %v640_v8 = vmax.f32 %v601_v4, 0.0 }
 0x217   :  { %v657_v9 = vpack.c.bf16 %v639_v6, %v637_v5 }
 0x218   :  { %v658_v10 = vpack.c.bf16 %v640_v8, %v638_v7  ;;  %v604_v11 = vpop.f32.mrb[28].mxu0 }
 0x219   :  { %v605_v12 = vadd.f32 %v604_v11, %v4020_v35  ;;  %v606_v13 = vpop.f32.mrb[29].mxu0 }
 0x21a   :  { %v607_v14 = vadd.f32 %v606_v13, %v4023_v36  ;;  %v608_v15 = vpop.f32.mrb[30].mxu0  ;;  %957 = vmatprep.mubr.bf16.mxu1 %v658_v10 }
 0x21b   :  { %v609_v16 = vadd.f32 %v608_v15, %v4020_v35  ;;  %v610_v17 = vpop.f32.mrb[31].mxu0  ;;  %958 = vmatmul.mubr.bf16.gmra.mrb[24].mxu1 %v657_v9  ;;  %v641_v19 = vmax.f32 %v605_v12, 0.0  ;;  %v3345_v35 = vld [vmem:[#allocation10 + $0x10] sm:$0xff]  }
 0x21c   :  { %v611_v18 = vadd.f32 %v610_v17, %v4023_v36  ;;  %v642_v21 = vmax.f32 %v607_v14, 0.0  ;;  %3099 = vmatprep.subr.bf16.mxu1 %v3345_v35  ;;  %v3346_v36 = vld [vmem:[#allocation10 + $0x18] sm:$0xff]  }
 0x21d   :  { %v643_v20 = vmax.f32 %v609_v16, 0.0  ;;  %3100 = vmatpush3.bf16.msra.mxu1 %v3345_v35 }
 0x21e   :  { %v644_v22 = vmax.f32 %v611_v18, 0.0  ;;  %3101 = vmatprep.subr.bf16.mxu1 %v3346_v36 }
 0x21f   :  { %v659_v23 = vpack.c.bf16 %v643_v20, %v641_v19 }
 0x220   :  { %v660_v24 = vpack.c.bf16 %v644_v22, %v642_v21 }
 0x221   :  { %3102 = vmatpush3.bf16.msra.mxu1 %v3346_v36 }
 0x222   :  { %967 = vmatprep.mubr.bf16.mxu1 %v660_v24  ;;  %3103 = vmatprep.subr.bf16.mxu1 %v3347_v29 }
 0x223   :  { %968 = vmatmul.mubr.bf16.gmra.mrb[28].mxu1 %v659_v23 }
 0x225   :  { %3104 = vmatpush3.bf16.msra.mxu1 %v3347_v29 }
 0x226   :  { %3105 = vmatprep.subr.bf16.mxu1 %v3348_v30 }
 0x229   :  { %3106 = vmatpush3.bf16.msra.mxu1 %v3348_v30 }
 0x2be   :  { %v899_v38 = vpop.f32.mrb[0].mxu1 }
 0x2bf   :  { %v900_v39 = vadd.f32 %v899_v38, %v4061_v33  ;;  %v901_v40 = vpop.f32.mrb[1].mxu1 }
 0x2c0   :  { %v902_v41 = vadd.f32 %v901_v40, %v4064_v37  ;;  %v903_v42 = vpop.f32.mrb[2].mxu1 }
 0x2c1   :  { %v904_v43 = vadd.f32 %v903_v42, %v4061_v33  ;;  %v905_v44 = vpop.f32.mrb[3].mxu1  ;;  %v978_v46 = vmax.f32 %v900_v39, 0.0 }
 0x2c2   :  { %v906_v45 = vadd.f32 %v905_v44, %v4064_v37  ;;  %v979_v48 = vmax.f32 %v902_v41, 0.0 }
 0x2c3   :  { %v980_v47 = vmax.f32 %v904_v43, 0.0 }
 0x2c4   :  { %v981_v49 = vmax.f32 %v906_v45, 0.0 }
 0x2c5   :  { %v1010_v50 = vpack.c.bf16 %v980_v47, %v978_v46 }
 0x2c6   :  { %v1011_v51 = vpack.c.bf16 %v981_v49, %v979_v48  ;;  %v909_v52 = vpop.f32.mrb[4].mxu1 }
 0x2c7   :  { %v910_v53 = vadd.f32 %v909_v52, %v4061_v33  ;;  %v911_v54 = vpop.f32.mrb[5].mxu1 }
 0x2c8   :  { %v912_v55 = vadd.f32 %v911_v54, %v4064_v37  ;;  %v913_v56 = vpop.f32.mrb[6].mxu1  ;;  %1193 = vmatprep.mubr.bf16.mxu0 %v1011_v51 }
 0x2c9   :  { %v914_v57 = vadd.f32 %v913_v56, %v4061_v33  ;;  %v915_v58 = vpop.f32.mrb[7].mxu1  ;;  %1194 = vmatmul.mubr.bf16.vlgmr.msra.gmra.mrb[32].mxu0 %v1010_v50  ;;  %v982_v60 = vmax.f32 %v910_v53, 0.0 }
 0x2ca   :  { %v916_v59 = vadd.f32 %v915_v58, %v4064_v37  ;;  %v983_v62 = vmax.f32 %v912_v55, 0.0 }
 0x2cb   :  { %v984_v61 = vmax.f32 %v914_v57, 0.0 }
 0x2cc   :  { %v985_v63 = vmax.f32 %v916_v59, 0.0 }
 0x2cd   :  { %v1012_v0 = vpack.c.bf16 %v984_v61, %v982_v60 }
 0x2ce   :  { %v1013_v1 = vpack.c.bf16 %v985_v63, %v983_v62  ;;  %v919_v2 = vpop.f32.mrb[8].mxu1 }
 0x2cf   :  { %v920_v3 = vadd.f32 %v919_v2, %v4061_v33  ;;  %v921_v4 = vpop.f32.mrb[9].mxu1 }
 0x2d0   :  { %v922_v5 = vadd.f32 %v921_v4, %v4064_v37  ;;  %v923_v6 = vpop.f32.mrb[10].mxu1  ;;  %1201 = vmatprep.mubr.bf16.mxu0 %v1013_v1 }
 0x2d1   :  { %v924_v7 = vadd.f32 %v923_v6, %v4061_v33  ;;  %v925_v8 = vpop.f32.mrb[11].mxu1  ;;  %1202 = vmatmul.mubr.bf16.gmra.mrb[36].mxu0 %v1012_v0  ;;  %v986_v10 = vmax.f32 %v920_v3, 0.0 }
 0x2d2   :  { %v926_v9 = vadd.f32 %v925_v8, %v4064_v37  ;;  %v987_v12 = vmax.f32 %v922_v5, 0.0 }
 0x2d3   :  { %v988_v11 = vmax.f32 %v924_v7, 0.0 }
 0x2d4   :  { %v989_v13 = vmax.f32 %v926_v9, 0.0 }
 0x2d5   :  { %v1014_v14 = vpack.c.bf16 %v988_v11, %v986_v10 }
 0x2d6   :  { %v1015_v15 = vpack.c.bf16 %v989_v13, %v987_v12  ;;  %v929_v16 = vpop.f32.mrb[12].mxu1 }
 0x2d7   :  { %v930_v17 = vadd.f32 %v929_v16, %v4061_v33  ;;  %v931_v18 = vpop.f32.mrb[13].mxu1 }
 0x2d8   :  { %v932_v19 = vadd.f32 %v931_v18, %v4064_v37  ;;  %v933_v20 = vpop.f32.mrb[14].mxu1  ;;  %1209 = vmatprep.mubr.bf16.mxu0 %v1015_v15 }
 0x2d9   :  { %v934_v21 = vadd.f32 %v933_v20, %v4061_v33  ;;  %v935_v22 = vpop.f32.mrb[15].mxu1  ;;  %1210 = vmatmul.mubr.bf16.gmra.mrb[40].mxu0 %v1014_v14  ;;  %v990_v24 = vmax.f32 %v930_v17, 0.0 }
 0x2da   :  { %v936_v23 = vadd.f32 %v935_v22, %v4064_v37  ;;  %v991_v26 = vmax.f32 %v932_v19, 0.0 }
 0x2db   :  { %v992_v25 = vmax.f32 %v934_v21, 0.0 }
 0x2dc   :  { %v993_v27 = vmax.f32 %v936_v23, 0.0 }
 0x2dd   :  { %v1016_v28 = vpack.c.bf16 %v992_v25, %v990_v24 }
 0x2de   :  { %v1017_v35 = vpack.c.bf16 %v993_v27, %v991_v26  ;;  %v939_v36 = vpop.f32.mrb[16].mxu1  ;;  %v3349_v26 = vld [vmem:[#allocation10 + $0x30] sm:$0xff]   ;;  %v3350_v27 = vld [vmem:[#allocation10 + $0x38] sm:$0xff]  }
 0x2df   :  { %v940_v29 = vadd.f32 %v939_v36, %v4061_v33  ;;  %v941_v30 = vpop.f32.mrb[17].mxu1  ;;  %3107 = vmatprep.subr.bf16.mxu1 %v3349_v26 }
 0x2e0   :  { %v942_v31 = vadd.f32 %v941_v30, %v4064_v37  ;;  %v943_v38 = vpop.f32.mrb[18].mxu1  ;;  %1217 = vmatprep.mubr.bf16.mxu0 %v1017_v35  ;;  %3108 = vmatpush3.bf16.msra.mxu1 %v3349_v26 }
 0x2e1   :  { %v944_v39 = vadd.f32 %v943_v38, %v4061_v33  ;;  %v945_v40 = vpop.f32.mrb[19].mxu1  ;;  %1218 = vmatmul.mubr.bf16.gmra.mrb[44].mxu0 %v1016_v28  ;;  %v994_v42 = vmax.f32 %v940_v29, 0.0  ;;  %3109 = vmatprep.subr.bf16.mxu1 %v3350_v27  ;;  %v3351_v28 = vld [vmem:[#allocation11] sm:$0xff]  }
 0x2e2   :  { %v946_v41 = vadd.f32 %v945_v40, %v4064_v37  ;;  %v995_v44 = vmax.f32 %v942_v31, 0.0 }
 0x2e3   :  { %v996_v43 = vmax.f32 %v944_v39, 0.0 }
 0x2e4   :  { %v997_v45 = vmax.f32 %v946_v41, 0.0  ;;  %3110 = vmatpush3.bf16.msra.mxu1 %v3350_v27 }
 0x2e5   :  { %v1018_v46 = vpack.c.bf16 %v996_v43, %v994_v42  ;;  %3127 = vmatprep.subr.bf16.mxu1 %v3351_v28 }
 0x2e6   :  { %v1019_v47 = vpack.c.bf16 %v997_v45, %v995_v44  ;;  %v949_v48 = vpop.f32.mrb[20].mxu1 }
 0x2e7   :  { %v950_v49 = vadd.f32 %v949_v48, %v4061_v33  ;;  %v951_v50 = vpop.f32.mrb[21].mxu1 }
 0x2e8   :  { %v952_v51 = vadd.f32 %v951_v50, %v4064_v37  ;;  %v953_v52 = vpop.f32.mrb[22].mxu1  ;;  %1225 = vmatprep.mubr.bf16.mxu0 %v1019_v47 }
 0x2e9   :  { %v954_v53 = vadd.f32 %v953_v52, %v4061_v33  ;;  %v955_v54 = vpop.f32.mrb[23].mxu1  ;;  %1226 = vmatmul.mubr.bf16.gmra.mrb[48].mxu0 %v1018_v46  ;;  %v998_v56 = vmax.f32 %v950_v49, 0.0 }
 0x2ea   :  { %v956_v55 = vadd.f32 %v955_v54, %v4064_v37  ;;  %v999_v58 = vmax.f32 %v952_v51, 0.0 }
 0x2eb   :  { %v1000_v57 = vmax.f32 %v954_v53, 0.0 }
 0x2ec   :  { %v1001_v59 = vmax.f32 %v956_v55, 0.0 }
 0x2ed   :  { %v1020_v60 = vpack.c.bf16 %v1000_v57, %v998_v56 }
 0x2ee   :  { %v1021_v61 = vpack.c.bf16 %v1001_v59, %v999_v58  ;;  %v959_v62 = vpop.f32.mrb[24].mxu1  ;;  %v3352_v58 = vld [vmem:[#allocation11 + $0x8] sm:$0xff]  }
 0x2ef   :  { %v960_v63 = vadd.f32 %v959_v62, %v4061_v33  ;;  %v961_v0 = vpop.f32.mrb[25].mxu1 }
 0x2f0   :  { %v962_v1 = vadd.f32 %v961_v0, %v4064_v37  ;;  %v963_v2 = vpop.f32.mrb[26].mxu1  ;;  %1233 = vmatprep.mubr.bf16.mxu0 %v1021_v61 }
 0x2f1   :  { %v964_v3 = vadd.f32 %v963_v2, %v4061_v33  ;;  %v965_v4 = vpop.f32.mrb[27].mxu1  ;;  %1234 = vmatmul.mubr.bf16.gmra.mrb[52].mxu0 %v1020_v60  ;;  %v1002_v6 = vmax.f32 %v960_v63, 0.0  ;;  %v3353_v63 = vld [vmem:[#allocation11 + $0x10] sm:$0xff]  }
 0x2f2   :  { %v966_v5 = vadd.f32 %v965_v4, %v4064_v37  ;;  %v1003_v8 = vmax.f32 %v962_v1, 0.0 }
 0x2f3   :  { %v1004_v7 = vmax.f32 %v964_v3, 0.0 }
 0x2f4   :  { %v1005_v9 = vmax.f32 %v966_v5, 0.0 }
 0x2f5   :  { %v1022_v10 = vpack.c.bf16 %v1004_v7, %v1002_v6  ;;  %v3354_v7 = vld [vmem:[#allocation11 + $0x18] sm:$0xff]  }
 0x2f6   :  { %v1023_v11 = vpack.c.bf16 %v1005_v9, %v1003_v8  ;;  %v969_v12 = vpop.f32.mrb[28].mxu1 }
 0x2f7   :  { %v970_v13 = vadd.f32 %v969_v12, %v4061_v33  ;;  %v971_v14 = vpop.f32.mrb[29].mxu1  ;;  %v3355_v12 = vld [vmem:[#allocation11 + $0x20] sm:$0xff]  }
 0x2f8   :  { %v972_v15 = vadd.f32 %v971_v14, %v4064_v37  ;;  %v973_v16 = vpop.f32.mrb[30].mxu1  ;;  %1241 = vmatprep.mubr.bf16.mxu0 %v1023_v11 }
 0x2f9   :  { %v974_v17 = vadd.f32 %v973_v16, %v4061_v33  ;;  %v975_v18 = vpop.f32.mrb[31].mxu1  ;;  %1242 = vmatmul.mubr.bf16.gmra.mrb[56].mxu0 %v1022_v10  ;;  %v1006_v20 = vmax.f32 %v970_v13, 0.0 }
 0x2fa   :  { %v976_v19 = vadd.f32 %v975_v18, %v4064_v37  ;;  %v1007_v22 = vmax.f32 %v972_v15, 0.0  ;;  %v4101_v37 = vld [vmem:[%s4260_s6] ss:$0 sm:$0xff] }
 0x2fb   :  { %v1008_v21 = vmax.f32 %v974_v17, 0.0 }
 0x2fc   :  { %v1009_v23 = vmax.f32 %v976_v19, 0.0 }
 0x2fd   :  { %v1024_v24 = vpack.c.bf16 %v1008_v21, %v1006_v20  ;;  %v3356_v20 = vld [vmem:[#allocation11 + $0x28] sm:$0xff]  }
 0x2fe   :  { %v1025_v25 = vpack.c.bf16 %v1009_v23, %v1007_v22 }
 0x300   :  { %1249 = vmatprep.mubr.bf16.mxu0 %v1025_v25 }
 0x301   :  { %1250 = vmatmul.mubr.bf16.gmra.mrb[60].mxu0 %v1024_v24 }
 0x39c   :  { %v2935_v33 = vpop.f32.mrb[32].mxu0 }
 0x39d   :  { %v2936_v35 = vpop.f32.mrb[33].mxu0 }
 0x39e   :  { %v2937_v36 = vadd.f32 %v2936_v35, %v2935_v33  ;;  %v2938_v29 = vpop.f32.mrb[34].mxu0 }
 0x39f   :  { %v2939_v30 = vpop.f32.mrb[35].mxu0 }
 0x3a0   :  { %v1196_v31 = vadd.f32 %v2937_v36, %v4101_v37  ;;  %v2940_v38 = vadd.f32 %v2939_v30, %v2938_v29 }
 0x3a2   :  { %v1199_v39 = vadd.f32 %v2940_v38, %v4101_v37  ;;  %v1258_v40 = vmax.f32 %v1196_v31, 0.0 }
 0x3a4   :  { %v1259_v41 = vmax.f32 %v1199_v39, 0.0  ;;  %v2941_v42 = vpop.f32.mrb[36].mxu0 }
 0x3a5   :  { %v2942_v43 = vpop.f32.mrb[37].mxu0 }
 0x3a6   :  { %v2943_v44 = vadd.f32 %v2942_v43, %v2941_v42  ;;  %v2944_v45 = vpop.f32.mrb[38].mxu0  ;;  %v1274_v46 = vpack.c.bf16 %v1259_v41, %v1258_v40 }
 0x3a7   :  { %v2945_v47 = vpop.f32.mrb[39].mxu0 }
 0x3a8   :  { %v1204_v48 = vadd.f32 %v2943_v44, %v4101_v37  ;;  %v2946_v49 = vadd.f32 %v2945_v47, %v2944_v45  ;;  %3111 = vmatprep.mubr.bf16.mxu1 %v1274_v46 }
 0x3aa   :  { %v1207_v50 = vadd.f32 %v2946_v49, %v4101_v37  ;;  %v1260_v51 = vmax.f32 %v1204_v48, 0.0 }
 0x3ac   :  { %v1261_v52 = vmax.f32 %v1207_v50, 0.0  ;;  %v2947_v53 = vpop.f32.mrb[40].mxu0 }
 0x3ad   :  { %v2948_v54 = vpop.f32.mrb[41].mxu0 }
 0x3ae   :  { %v1275_v55 = vpack.c.bf16 %v1261_v52, %v1260_v51  ;;  %v2949_v56 = vadd.f32 %v2948_v54, %v2947_v53  ;;  %v2950_v57 = vpop.f32.mrb[42].mxu0 }
 0x3af   :  { %v2951_v59 = vpop.f32.mrb[43].mxu0 }
 0x3b0   :  { %v1212_v60 = vadd.f32 %v2949_v56, %v4101_v37  ;;  %v2952_v61 = vadd.f32 %v2951_v59, %v2950_v57  ;;  %3112 = vmatmul.mubr.bf16.vlgmr.msra.gmra.mrb[32].mxu1 %v1275_v55 }
 0x3b1   :  { %3128 = vmatpush3.bf16.msra.mxu1 %v3351_v28 }
 0x3b2   :  { %v1215_v62 = vadd.f32 %v2952_v61, %v4101_v37  ;;  %3129 = vmatprep.subr.bf16.mxu1 %v3352_v58  ;;  %v1262_v0 = vmax.f32 %v1212_v60, 0.0 }
 0x3b4   :  { %v1263_v1 = vmax.f32 %v1215_v62, 0.0  ;;  %v2953_v2 = vpop.f32.mrb[44].mxu0 }
 0x3b5   :  { %v2954_v3 = vpop.f32.mrb[45].mxu0  ;;  %3130 = vmatpush3.bf16.msra.mxu1 %v3352_v58 }
 0x3b6   :  { %v2955_v4 = vadd.f32 %v2954_v3, %v2953_v2  ;;  %v2956_v5 = vpop.f32.mrb[46].mxu0  ;;  %v1276_v6 = vpack.c.bf16 %v1263_v1, %v1262_v0  ;;  %3131 = vmatprep.subr.bf16.mxu1 %v3353_v63  ;;  %v3357_v0 = vld [vmem:[#allocation11 + $0x30] sm:$0xff]   ;;  %v3358_v1 = vld [vmem:[#allocation11 + $0x38] sm:$0xff]   ;;  %v3359_v2 = vld [vmem:[#allocation13] sm:$0xff]  }
 0x3b7   :  { %v2957_v8 = vpop.f32.mrb[47].mxu0  ;;  %v3360_v3 = vld [vmem:[#allocation13 + $0x8] sm:$0xff]   ;;  %3159 = vmatprep.subr.bf16.mxu0 %v3359_v2 }
 0x3b8   :  { %v1220_v9 = vadd.f32 %v2955_v4, %v4101_v37  ;;  %v2958_v10 = vadd.f32 %v2957_v8, %v2956_v5  ;;  %3115 = vmatprep.mubr.bf16.mxu1 %v1276_v6  ;;  %3160 = vmatpush3.bf16.msra.mxu0 %v3359_v2  ;;  %v3361_v4 = vld [vmem:[#allocation13 + $0x10] sm:$0xff]   ;;  %v3362_v5 = vld [vmem:[#allocation13 + $0x18] sm:$0xff]   ;;  %v3364_v6 = vld [vmem:[#allocation13 + $0x28] sm:$0xff]  }
 0x3b9   :  { %3132 = vmatpush3.bf16.msra.mxu1 %v3353_v63  ;;  %3161 = vmatprep.subr.bf16.mxu0 %v3360_v3  ;;  %v2827_v8 = vld [vmem:[%s4262_s8] ss:$0 sm:$0xff] }
 0x3ba   :  { %v1223_v11 = vadd.f32 %v2958_v10, %v4101_v37  ;;  %3133 = vmatprep.subr.bf16.mxu1 %v3354_v7  ;;  %v1264_v13 = vmax.f32 %v1220_v9, 0.0 }
 0x3bc   :  { %v1265_v14 = vmax.f32 %v1223_v11, 0.0  ;;  %v2959_v15 = vpop.f32.mrb[48].mxu0  ;;  %3162 = vmatpush3.bf16.msra.mxu0 %v3360_v3 }
 0x3bd   :  { %v2960_v16 = vpop.f32.mrb[49].mxu0  ;;  %3134 = vmatpush3.bf16.msra.mxu1 %v3354_v7  ;;  %3163 = vmatprep.subr.bf16.mxu0 %v3361_v4  ;;  %v3365_v7 = vld [vmem:[#allocation13 + $0x30] sm:$0xff]  }
 0x3be   :  { %v2961_v17 = vadd.f32 %v2960_v16, %v2959_v15  ;;  %v2962_v18 = vpop.f32.mrb[50].mxu0  ;;  %v1277_v19 = vpack.c.bf16 %v1265_v14, %v1264_v13  ;;  %3135 = vmatprep.subr.bf16.mxu1 %v3355_v12 }
 0x3bf   :  { %v2963_v21 = vpop.f32.mrb[51].mxu0 }
 0x3c0   :  { %v1228_v22 = vadd.f32 %v2961_v17, %v4101_v37  ;;  %v2964_v23 = vadd.f32 %v2963_v21, %v2962_v18  ;;  %3116 = vmatmul.mubr.bf16.gmra.mrb[36].mxu1 %v1277_v19  ;;  %3164 = vmatpush3.bf16.msra.mxu0 %v3361_v4  ;;  %v3366_v4 = vld [vmem:[#allocation13 + $0x38] sm:$0xff]  }
 0x3c1   :  { %3136 = vmatpush3.bf16.msra.mxu1 %v3355_v12  ;;  %3165 = vmatprep.subr.bf16.mxu0 %v3362_v5 }
 0x3c2   :  { %v1231_v24 = vadd.f32 %v2964_v23, %v4101_v37  ;;  %3137 = vmatprep.subr.bf16.mxu1 %v3356_v20  ;;  %v1266_v25 = vmax.f32 %v1228_v22, 0.0 }
 0x3c4   :  { %v1267_v26 = vmax.f32 %v1231_v24, 0.0  ;;  %v2965_v27 = vpop.f32.mrb[52].mxu0  ;;  %3166 = vmatpush3.bf16.msra.mxu0 %v3362_v5  ;;  %v3367_v5 = vld [vmem:[#allocation14] ss:$8 sps:$4 sm:$0xff]  }
 0x3c5   :  { %v2966_v28 = vpop.f32.mrb[53].mxu0  ;;  %3138 = vmatpush3.bf16.msra.mxu1 %v3356_v20 }
 0x3c6   :  { %v2967_v33 = vadd.f32 %v2966_v28, %v2965_v27  ;;  %v2968_v35 = vpop.f32.mrb[54].mxu0  ;;  %v1278_v36 = vpack.c.bf16 %v1267_v26, %v1266_v25  ;;  %3139 = vmatprep.subr.bf16.mxu1 %v3357_v0 }
 0x3c7   :  { %v2969_v29 = vpop.f32.mrb[55].mxu0 }
 0x3c8   :  { %v1236_v30 = vadd.f32 %v2967_v33, %v4101_v37  ;;  %v2970_v31 = vadd.f32 %v2969_v29, %v2968_v35  ;;  %3119 = vmatprep.mubr.bf16.mxu1 %v1278_v36 }
 0x3c9   :  { %3140 = vmatpush3.bf16.msra.mxu1 %v3357_v0 }
 0x3ca   :  { %v1239_v38 = vadd.f32 %v2970_v31, %v4101_v37  ;;  %v1268_v39 = vmax.f32 %v1236_v30, 0.0  ;;  %3141 = vmatprep.subr.bf16.mxu1 %v3358_v1 }
 0x3cc   :  { %v1269_v40 = vmax.f32 %v1239_v38, 0.0  ;;  %v2971_v41 = vpop.f32.mrb[56].mxu0 }
 0x3cd   :  { %v2972_v42 = vpop.f32.mrb[57].mxu0  ;;  %3142 = vmatpush3.bf16.msra.mxu1 %v3358_v1 }
 0x3ce   :  { %v2973_v43 = vadd.f32 %v2972_v42, %v2971_v41  ;;  %v2974_v44 = vpop.f32.mrb[58].mxu0  ;;  %v1279_v45 = vpack.c.bf16 %v1269_v40, %v1268_v39 }
 0x3cf   :  { %v2975_v46 = vpop.f32.mrb[59].mxu0 }
 0x3d0   :  { %v1244_v47 = vadd.f32 %v2973_v43, %v4101_v37  ;;  %v2976_v48 = vadd.f32 %v2975_v46, %v2974_v44  ;;  %3120 = vmatmul.mubr.bf16.gmra.mrb[40].mxu1 %v1279_v45 }
 0x3d2   :  { %v1247_v49 = vadd.f32 %v2976_v48, %v4101_v37  ;;  %v1270_v50 = vmax.f32 %v1244_v47, 0.0 }
 0x3d4   :  { %v1271_v51 = vmax.f32 %v1247_v49, 0.0  ;;  %v2977_v52 = vpop.f32.mrb[60].mxu0 }
 0x3d5   :  { %v2978_v53 = vpop.f32.mrb[61].mxu0 }
 0x3d6   :  { %v2979_v54 = vadd.f32 %v2978_v53, %v2977_v52  ;;  %v2980_v55 = vpop.f32.mrb[62].mxu0  ;;  %v1280_v56 = vpack.c.bf16 %v1271_v51, %v1270_v50 }
 0x3d7   :  { %v2981_v57 = vpop.f32.mrb[63].mxu0 }
 0x3d8   :  { %v1252_v58 = vadd.f32 %v2979_v54, %v4101_v37  ;;  %v2982_v59 = vadd.f32 %v2981_v57, %v2980_v55  ;;  %3123 = vmatprep.mubr.bf16.mxu1 %v1280_v56 }
 0x3da   :  { %v1255_v60 = vadd.f32 %v2982_v59, %v4101_v37  ;;  %v1272_v61 = vmax.f32 %v1252_v58, 0.0  ;;  %v3363_v37 = vld [vmem:[#allocation13 + $0x20] sm:$0xff]  }
 0x3db   :  { %3167 = vmatprep.subr.bf16.mxu0 %v3363_v37 }
 0x3dc   :  { %v1273_v62 = vmax.f32 %v1255_v60, 0.0  ;;  %3168 = vmatpush3.bf16.msra.mxu0 %v3363_v37  ;;  %v3369_v37 = vld [vmem:[#allocation14 + $0x4] ss:$8 sps:$4 sm:$0xff]  }
 0x3dd   :  { %3169 = vmatprep.subr.bf16.mxu0 %v3364_v6  ;;  %1966 = vmatprep.subr.bf16.mxu1 %v3369_v37 }
 0x3de   :  { %v1281_v63 = vpack.c.bf16 %v1273_v62, %v1272_v61 }
 0x3e0   :  { %3124 = vmatmul.mubr.bf16.gmra.mrb[44].mxu1 %v1281_v63  ;;  %3170 = vmatpush3.bf16.msra.mxu0 %v3364_v6  ;;  %v3372_v6 = vld [vmem:[#allocation14 + $0x14] ss:$8 sps:$4 sm:$0xff]  }
 0x3e1   :  { %3171 = vmatprep.subr.bf16.mxu0 %v3365_v7 }
 0x3e4   :  { %3172 = vmatpush3.bf16.msra.mxu0 %v3365_v7  ;;  %v3370_v7 = vld [vmem:[#allocation14 + $0x10] ss:$8 sps:$4 sm:$0xff]  }
 0x3e5   :  { %3173 = vmatprep.subr.bf16.mxu0 %v3366_v4 }
 0x3e8   :  { %3174 = vmatpush3.bf16.msra.mxu0 %v3366_v4 }
 0x483   :  { %v3113_v9 = vpop.f32.mrb[32].mxu1 }
 0x484   :  { %v1396_v10 = vadd.f32 %v3113_v9, %v2827_v8  ;;  %v1387_v11 = vpop.f32.mrb[33].mxu1  ;;  %v3375_v9 = vld [vmem:[#allocation14 + $0x24] ss:$8 sps:$4 sm:$0xff]  }
 0x485   :  { %v1388_v12 = vadd.f32 %v2827_v8, %v1387_v11  ;;  %v3114_v13 = vpop.f32.mrb[34].mxu1  ;;  %v3376_v11 = vld [vmem:[#allocation14 + $0x30] ss:$8 sps:$4 sm:$0xff]  }
 0x486   :  { %v1399_v14 = vadd.f32 %v3114_v13, %v2827_v8  ;;  %v1390_v15 = vpop.f32.mrb[35].mxu1  ;;  %v1452_v17 = vmax.f32 %v1396_v10, 0.0  ;;  %v3378_v10 = vld [vmem:[#allocation14 + $0x34] ss:$8 sps:$4 sm:$0xff]   ;;  %v3379_v13 = vld [vmem:[#allocation14 + $0x40] ss:$8 sps:$4 sm:$0xff]  }
 0x487   :  { %v1391_v16 = vadd.f32 %v2827_v8, %v1390_v15  ;;  %v1450_v19 = vmax.f32 %v1388_v12, 0.0  ;;  %v3381_v12 = vld [vmem:[#allocation14 + $0x44] ss:$8 sps:$4 sm:$0xff]   ;;  %v3382_v15 = vld [vmem:[#allocation14 + $0x50] ss:$8 sps:$4 sm:$0xff]  }
 0x488   :  { %v1453_v18 = vmax.f32 %v1399_v14, 0.0  ;;  %v3384_v14 = vld [vmem:[#allocation14 + $0x54] ss:$8 sps:$4 sm:$0xff]  }
 0x489   :  { %v1451_v20 = vmax.f32 %v1391_v16, 0.0  ;;  %v2836_v16 = vld [vmem:[%s4264_s10] ss:$0 sm:$0xff] }
 0x48a   :  { %v1467_v21 = vpack.c.bf16 %v1453_v18, %v1452_v17 }
 0x48b   :  { %v1466_v22 = vpack.c.bf16 %v1451_v20, %v1450_v19 }
 0x48d   :  { %3143 = vmatprep.mubr.bf16.mxu1 %v1466_v22 }
 0x48e   :  { %3144 = vmatmul.mubr.bf16.vlgmr.msra.gmra.mrb[48].mxu1 %v1467_v21 }
 0x48f   :  { %1967 = vmatpush1.bf16.msra.mxu1 %v3367_v5 }
 0x490   :  { %1968 = vmatprep.subr.bf16.mxu1 %v3372_v6 }
 0x493   :  { %v3117_v23 = vpop.f32.mrb[36].mxu1  ;;  %1969 = vmatpush1.bf16.msra.mxu1 %v3370_v7 }
 0x494   :  { %v1412_v24 = vadd.f32 %v3117_v23, %v2827_v8  ;;  %v1403_v25 = vpop.f32.mrb[37].mxu1  ;;  %1970 = vmatprep.subr.bf16.mxu1 %v3375_v9 }
 0x495   :  { %v1404_v26 = vadd.f32 %v2827_v8, %v1403_v25  ;;  %v3118_v27 = vpop.f32.mrb[38].mxu1 }
 0x496   :  { %v1415_v28 = vadd.f32 %v3118_v27, %v2827_v8  ;;  %v1406_v33 = vpop.f32.mrb[39].mxu1  ;;  %v1456_v36 = vmax.f32 %v1412_v24, 0.0 }
 0x497   :  { %v1407_v35 = vadd.f32 %v2827_v8, %v1406_v33  ;;  %v1454_v30 = vmax.f32 %v1404_v26, 0.0 }
 0x498   :  { %v1457_v29 = vmax.f32 %v1415_v28, 0.0 }
 0x499   :  { %v1455_v31 = vmax.f32 %v1407_v35, 0.0 }
 0x49a   :  { %v1469_v38 = vpack.c.bf16 %v1457_v29, %v1456_v36 }
 0x49b   :  { %v1468_v39 = vpack.c.bf16 %v1455_v31, %v1454_v30 }
 0x49d   :  { %3147 = vmatprep.mubr.bf16.mxu1 %v1468_v39 }
 0x49e   :  { %3148 = vmatmul.mubr.bf16.gmra.mrb[52].mxu1 %v1469_v38 }
 0x4a3   :  { %v3121_v40 = vpop.f32.mrb[40].mxu1 }
 0x4a4   :  { %v1428_v41 = vadd.f32 %v3121_v40, %v2827_v8  ;;  %v1419_v42 = vpop.f32.mrb[41].mxu1 }
 0x4a5   :  { %v1420_v43 = vadd.f32 %v2827_v8, %v1419_v42  ;;  %v3122_v44 = vpop.f32.mrb[42].mxu1 }
 0x4a6   :  { %v1431_v45 = vadd.f32 %v3122_v44, %v2827_v8  ;;  %v1422_v46 = vpop.f32.mrb[43].mxu1  ;;  %v1460_v48 = vmax.f32 %v1428_v41, 0.0 }
 0x4a7   :  { %v1423_v47 = vadd.f32 %v2827_v8, %v1422_v46  ;;  %v1458_v50 = vmax.f32 %v1420_v43, 0.0 }
 0x4a8   :  { %v1461_v49 = vmax.f32 %v1431_v45, 0.0 }
 0x4a9   :  { %v1459_v51 = vmax.f32 %v1423_v47, 0.0 }
 0x4aa   :  { %v1471_v52 = vpack.c.bf16 %v1461_v49, %v1460_v48 }
 0x4ab   :  { %v1470_v53 = vpack.c.bf16 %v1459_v51, %v1458_v50 }
 0x4ad   :  { %3151 = vmatprep.mubr.bf16.mxu1 %v1470_v53 }
 0x4ae   :  { %3152 = vmatmul.mubr.bf16.gmra.mrb[56].mxu1 %v1471_v52 }
 0x4b3   :  { %v3125_v54 = vpop.f32.mrb[44].mxu1 }
 0x4b4   :  { %v1444_v55 = vadd.f32 %v3125_v54, %v2827_v8  ;;  %v1435_v56 = vpop.f32.mrb[45].mxu1 }
 0x4b5   :  { %v1436_v57 = vadd.f32 %v2827_v8, %v1435_v56  ;;  %v3126_v58 = vpop.f32.mrb[46].mxu1 }
 0x4b6   :  { %v1447_v59 = vadd.f32 %v3126_v58, %v2827_v8  ;;  %v1438_v60 = vpop.f32.mrb[47].mxu1  ;;  %v1464_v62 = vmax.f32 %v1444_v55, 0.0 }
 0x4b7   :  { %v1439_v61 = vadd.f32 %v2827_v8, %v1438_v60  ;;  %v1462_v0 = vmax.f32 %v1436_v57, 0.0  ;;  %v3373_v8 = vld [vmem:[#allocation14 + $0x20] ss:$8 sps:$4 sm:$0xff]  }
 0x4b8   :  { %v1465_v63 = vmax.f32 %v1447_v59, 0.0  ;;  %1971 = vmatpush1.bf16.msra.mxu1 %v3373_v8 }
 0x4b9   :  { %v1463_v1 = vmax.f32 %v1439_v61, 0.0  ;;  %1972 = vmatprep.subr.bf16.mxu1 %v3378_v10 }
 0x4ba   :  { %v1473_v2 = vpack.c.bf16 %v1465_v63, %v1464_v62 }
 0x4bb   :  { %v1472_v3 = vpack.c.bf16 %v1463_v1, %v1462_v0 }
 0x4bc   :  { %1973 = vmatpush1.bf16.msra.mxu1 %v3376_v11  ;;  %v3387_v11 = vld [vmem:[#allocation14 + $0x64] ss:$8 sps:$4 sm:$0xff]  }
 0x4bd   :  { %3155 = vmatprep.mubr.bf16.mxu1 %v1472_v3  ;;  %1974 = vmatprep.subr.bf16.mxu1 %v3381_v12  ;;  %v3385_v12 = vld [vmem:[#allocation14 + $0x60] ss:$8 sps:$4 sm:$0xff]  }
 0x4be   :  { %3156 = vmatmul.mubr.bf16.gmra.mrb[60].mxu1 %v1473_v2 }
 0x4c0   :  { %1975 = vmatpush1.bf16.msra.mxu1 %v3379_v13  ;;  %v3390_v13 = vld [vmem:[#allocation14 + $0x74] ss:$8 sps:$4 sm:$0xff]  }
 0x4c1   :  { %1976 = vmatprep.subr.bf16.mxu1 %v3384_v14  ;;  %v3388_v14 = vld [vmem:[#allocation14 + $0x70] ss:$8 sps:$4 sm:$0xff]  }
 0x4c4   :  { %1977 = vmatpush1.bf16.msra.mxu1 %v3382_v15  ;;  %v3725_v15 = vmov 0  }
 0x4c5   :  { %1978 = vmatprep.subr.bf16.mxu1 %v3387_v11  ;;  %1998 = vmatprep.mubr.bf16.mxu1 %v3725_v15 }
 0x4c8   :  { %1979 = vmatpush1.bf16.msra.mxu1 %v3385_v12 }
 0x4c9   :  { %1980 = vmatprep.subr.bf16.mxu1 %v3390_v13 }
 0x4cc   :  { %1981 = vmatpush1.bf16.msra.mxu1 %v3388_v14 }
 0x561   :  { %v3145_v17 = vpop.f32.mrb[48].mxu1 }
 0x562   :  { %v1588_v18 = vadd.f32 %v3145_v17, %v2836_v16  ;;  %v1579_v19 = vpop.f32.mrb[49].mxu1  ;;  %v3393_v17 = vld [vmem:[#allocation16 + $0x4] ss:$8 sps:$4 sm:$0xff]  }
 0x563   :  { %v1580_v20 = vadd.f32 %v2836_v16, %v1579_v19  ;;  %v3146_v21 = vpop.f32.mrb[50].mxu1  ;;  %2331 = vmatprep.subr.bf16.mxu0 %v3393_v17  ;;  %v3394_v19 = vld [vmem:[#allocation16 + $0x10] ss:$8 sps:$4 sm:$0xff]  }
 0x564   :  { %v1591_v22 = vadd.f32 %v3146_v21, %v2836_v16  ;;  %v1582_v23 = vpop.f32.mrb[51].mxu1  ;;  %v1644_v25 = vmax.f32 %v1588_v18, 0.0  ;;  %v3396_v18 = vld [vmem:[#allocation16 + $0x14] ss:$8 sps:$4 sm:$0xff]   ;;  %v3397_v21 = vld [vmem:[#allocation16 + $0x20] ss:$8 sps:$4 sm:$0xff]  }
 0x565   :  { %v1583_v24 = vadd.f32 %v2836_v16, %v1582_v23  ;;  %v1642_v27 = vmax.f32 %v1580_v20, 0.0  ;;  %v3399_v20 = vld [vmem:[#allocation16 + $0x24] ss:$8 sps:$4 sm:$0xff]   ;;  %v3400_v23 = vld [vmem:[#allocation16 + $0x30] ss:$8 sps:$4 sm:$0xff]  }
 0x566   :  { %v1645_v26 = vmax.f32 %v1591_v22, 0.0  ;;  %v3402_v22 = vld [vmem:[#allocation16 + $0x34] ss:$8 sps:$4 sm:$0xff]  }
 0x567   :  { %v1643_v28 = vmax.f32 %v1583_v24, 0.0  ;;  %v3405_v24 = vld [vmem:[#allocation16 + $0x44] ss:$8 sps:$4 sm:$0xff]  }
 0x568   :  { %v1659_v33 = vpack.c.bf16 %v1645_v26, %v1644_v25  ;;  %v3403_v25 = vld [vmem:[#allocation16 + $0x40] ss:$8 sps:$4 sm:$0xff]   ;;  %v3408_v26 = vld [vmem:[#allocation16 + $0x54] ss:$8 sps:$4 sm:$0xff]  }
 0x569   :  { %v1658_v35 = vpack.c.bf16 %v1643_v28, %v1642_v27  ;;  %v3406_v27 = vld [vmem:[#allocation16 + $0x50] ss:$8 sps:$4 sm:$0xff]   ;;  %v3411_v28 = vld [vmem:[#allocation16 + $0x64] ss:$8 sps:$4 sm:$0xff]  }
 0x56b   :  { %3175 = vmatprep.mubr.bf16.mxu0 %v1658_v35  ;;  %v3414_v35 = vld [vmem:[#allocation16 + $0x74] ss:$8 sps:$4 sm:$0xff]  }
 0x56c   :  { %3176 = vmatmul.mubr.bf16.vlgmr.msra.gmra.mrb[64].mxu0 %v1659_v33  ;;  %v3409_v33 = vld [vmem:[#allocation16 + $0x60] ss:$8 sps:$4 sm:$0xff]  }
 0x571   :  { %v3149_v36 = vpop.f32.mrb[52].mxu1 }
 0x572   :  { %v1604_v29 = vadd.f32 %v3149_v36, %v2836_v16  ;;  %v1595_v30 = vpop.f32.mrb[53].mxu1  ;;  %v3412_v36 = vld [vmem:[#allocation16 + $0x70] ss:$8 sps:$4 sm:$0xff]  }
 0x573   :  { %v1596_v31 = vadd.f32 %v2836_v16, %v1595_v30  ;;  %v3150_v38 = vpop.f32.mrb[54].mxu1  ;;  %v3415_v30 = vld [vmem:[#allocation16 + $0x80] ss:$8 sps:$4 sm:$0xff]  }
 0x574   :  { %v1607_v39 = vadd.f32 %v3150_v38, %v2836_v16  ;;  %v1598_v40 = vpop.f32.mrb[55].mxu1  ;;  %v1648_v42 = vmax.f32 %v1604_v29, 0.0  ;;  %v3417_v29 = vld [vmem:[#allocation16 + $0x84] ss:$8 sps:$4 sm:$0xff]   ;;  %v3418_v38 = vld [vmem:[#allocation16 + $0x90] ss:$8 sps:$4 sm:$0xff]  }
 0x575   :  { %v1599_v41 = vadd.f32 %v2836_v16, %v1598_v40  ;;  %v1646_v44 = vmax.f32 %v1596_v31, 0.0  ;;  %v3420_v31 = vld [vmem:[#allocation16 + $0x94] ss:$8 sps:$4 sm:$0xff]   ;;  %v3421_v40 = vld [vmem:[#allocation16 + $0xa0] ss:$8 sps:$4 sm:$0xff]  }
 0x576   :  { %v1649_v43 = vmax.f32 %v1607_v39, 0.0  ;;  %v3423_v39 = vld [vmem:[#allocation16 + $0xa4] ss:$8 sps:$4 sm:$0xff]  }
 0x577   :  { %v1647_v45 = vmax.f32 %v1599_v41, 0.0  ;;  %v3426_v41 = vld [vmem:[#allocation16 + $0xb4] ss:$8 sps:$4 sm:$0xff]  }
 0x578   :  { %v1661_v46 = vpack.c.bf16 %v1649_v43, %v1648_v42  ;;  %v3424_v42 = vld [vmem:[#allocation16 + $0xb0] ss:$8 sps:$4 sm:$0xff]   ;;  %v3429_v43 = vld [vmem:[#allocation16 + $0xc4] ss:$8 sps:$4 sm:$0xff]  }
 0x579   :  { %v1660_v47 = vpack.c.bf16 %v1647_v45, %v1646_v44  ;;  %v3427_v44 = vld [vmem:[#allocation16 + $0xc0] ss:$8 sps:$4 sm:$0xff]   ;;  %v3432_v45 = vld [vmem:[#allocation16 + $0xd4] ss:$8 sps:$4 sm:$0xff]  }
 0x57b   :  { %3179 = vmatprep.mubr.bf16.mxu0 %v1660_v47  ;;  %v2845_v47 = vld [vmem:[%s4266_s12] ss:$0 sm:$0xff] }
 0x57c   :  { %3180 = vmatmul.mubr.bf16.gmra.mrb[68].mxu0 %v1661_v46  ;;  %v3430_v46 = vld [vmem:[#allocation16 + $0xd0] ss:$8 sps:$4 sm:$0xff]  }
 0x581   :  { %v3153_v48 = vpop.f32.mrb[56].mxu1 }
 0x582   :  { %v1620_v49 = vadd.f32 %v3153_v48, %v2836_v16  ;;  %v1611_v50 = vpop.f32.mrb[57].mxu1 }
 0x583   :  { %v1612_v51 = vadd.f32 %v2836_v16, %v1611_v50  ;;  %v3154_v52 = vpop.f32.mrb[58].mxu1 }
 0x584   :  { %v1623_v53 = vadd.f32 %v3154_v52, %v2836_v16  ;;  %v1614_v54 = vpop.f32.mrb[59].mxu1  ;;  %v1652_v56 = vmax.f32 %v1620_v49, 0.0 }
 0x585   :  { %v1615_v55 = vadd.f32 %v2836_v16, %v1614_v54  ;;  %v1650_v58 = vmax.f32 %v1612_v51, 0.0 }
 0x586   :  { %v1653_v57 = vmax.f32 %v1623_v53, 0.0 }
 0x587   :  { %v1651_v59 = vmax.f32 %v1615_v55, 0.0 }
 0x588   :  { %v1663_v60 = vpack.c.bf16 %v1653_v57, %v1652_v56 }
 0x589   :  { %v1662_v61 = vpack.c.bf16 %v1651_v59, %v1650_v58 }
 0x58b   :  { %3183 = vmatprep.mubr.bf16.mxu0 %v1662_v61 }
 0x58c   :  { %3184 = vmatmul.mubr.bf16.gmra.mrb[72].mxu0 %v1663_v60 }
 0x591   :  { %v3157_v62 = vpop.f32.mrb[60].mxu1 }
 0x592   :  { %v1636_v63 = vadd.f32 %v3157_v62, %v2836_v16  ;;  %v1627_v0 = vpop.f32.mrb[61].mxu1 }
 0x593   :  { %v1628_v1 = vadd.f32 %v2836_v16, %v1627_v0  ;;  %v3158_v2 = vpop.f32.mrb[62].mxu1 }
 0x594   :  { %v1639_v3 = vadd.f32 %v3158_v2, %v2836_v16  ;;  %v1630_v4 = vpop.f32.mrb[63].mxu1  ;;  %v1656_v37 = vmax.f32 %v1636_v63, 0.0 }
 0x595   :  { %v1631_v5 = vadd.f32 %v2836_v16, %v1630_v4  ;;  %v1654_v7 = vmax.f32 %v1628_v1, 0.0  ;;  %v3391_v16 = vld [vmem:[#allocation16] ss:$8 sps:$4 sm:$0xff]  }
 0x596   :  { %v1657_v6 = vmax.f32 %v1639_v3, 0.0  ;;  %2332 = vmatpush1.bf16.msra.mxu0 %v3391_v16 }
 0x597   :  { %v1655_v9 = vmax.f32 %v1631_v5, 0.0  ;;  %2333 = vmatprep.subr.bf16.mxu0 %v3396_v18 }
 0x598   :  { %v1665_v8 = vpack.c.bf16 %v1657_v6, %v1656_v37 }
 0x599   :  { %v1664_v10 = vpack.c.bf16 %v1655_v9, %v1654_v7 }
 0x59a   :  { %2334 = vmatpush1.bf16.msra.mxu0 %v3394_v19 }
 0x59b   :  { %3187 = vmatprep.mubr.bf16.mxu0 %v1664_v10  ;;  %2335 = vmatprep.subr.bf16.mxu0 %v3399_v20 }
 0x59c   :  { %3188 = vmatmul.mubr.bf16.gmra.mrb[76].mxu0 %v1665_v8 }
 0x59e   :  { %2336 = vmatpush1.bf16.msra.mxu0 %v3397_v21 }
 0x59f   :  { %2337 = vmatprep.subr.bf16.mxu0 %v3402_v22 }
 0x5a2   :  { %2338 = vmatpush1.bf16.msra.mxu0 %v3400_v23 }
 0x5a3   :  { %2339 = vmatprep.subr.bf16.mxu0 %v3405_v24 }
 0x5a6   :  { %2340 = vmatpush1.bf16.msra.mxu0 %v3403_v25 }
 0x5a7   :  { %2341 = vmatprep.subr.bf16.mxu0 %v3408_v26 }
 0x5aa   :  { %2342 = vmatpush1.bf16.msra.mxu0 %v3406_v27 }
 0x5ab   :  { %2343 = vmatprep.subr.bf16.mxu0 %v3411_v28 }
 0x5ae   :  { %2344 = vmatpush1.bf16.msra.mxu0 %v3409_v33 }
 0x5af   :  { %2345 = vmatprep.subr.bf16.mxu0 %v3414_v35 }
 0x5b2   :  { %2346 = vmatpush1.bf16.msra.mxu0 %v3412_v36 }
 0x5b3   :  { %2347 = vmatprep.subr.bf16.mxu0 %v3417_v29 }
 0x5b6   :  { %2348 = vmatpush1.bf16.msra.mxu0 %v3415_v30 }
 0x5b7   :  { %2349 = vmatprep.subr.bf16.mxu0 %v3420_v31 }
 0x5ba   :  { %2350 = vmatpush1.bf16.msra.mxu0 %v3418_v38 }
 0x5bb   :  { %2351 = vmatprep.subr.bf16.mxu0 %v3423_v39 }
 0x5be   :  { %2352 = vmatpush1.bf16.msra.mxu0 %v3421_v40 }
 0x5bf   :  { %2353 = vmatprep.subr.bf16.mxu0 %v3426_v41 }
 0x5c2   :  { %2354 = vmatpush1.bf16.msra.mxu0 %v3424_v42 }
 0x5c3   :  { %2355 = vmatprep.subr.bf16.mxu0 %v3429_v43  ;;  %v3435_v43 = vld [vmem:[#allocation16 + $0xe4] ss:$8 sps:$4 sm:$0xff]  }
 0x5c6   :  { %2356 = vmatpush1.bf16.msra.mxu0 %v3427_v44  ;;  %v3433_v44 = vld [vmem:[#allocation16 + $0xe0] ss:$8 sps:$4 sm:$0xff]  }
 0x5c7   :  { %2357 = vmatprep.subr.bf16.mxu0 %v3432_v45  ;;  %v3438_v45 = vld [vmem:[#allocation16 + $0xf4] ss:$8 sps:$4 sm:$0xff]  }
 0x5ca   :  { %2358 = vmatpush1.bf16.msra.mxu0 %v3430_v46  ;;  %v3436_v46 = vld [vmem:[#allocation16 + $0xf0] ss:$8 sps:$4 sm:$0xff]  }
 0x5cb   :  { %2359 = vmatprep.subr.bf16.mxu0 %v3435_v43 }
 0x5ce   :  { %2360 = vmatpush1.bf16.msra.mxu0 %v3433_v44 }
 0x5cf   :  { %2361 = vmatprep.subr.bf16.mxu0 %v3438_v45 }
 0x5d2   :  { %2362 = vmatpush1.bf16.msra.mxu0 %v3436_v46 }
 0x63f   :  { %v3177_v48 = vpop.f32.mrb[64].mxu0 }
 0x640   :  { %v1780_v49 = vadd.f32 %v3177_v48, %v2845_v47  ;;  %v1771_v50 = vpop.f32.mrb[65].mxu0  ;;  %v3439_v48 = vld [vmem:[#allocation17 + $0x40] sm:$0xff]  }
 0x641   :  { %v1772_v51 = vadd.f32 %v2845_v47, %v1771_v50  ;;  %v3178_v52 = vpop.f32.mrb[66].mxu0  ;;  %3031 = vmatprep.subr.bf16.mxu1 %v3439_v48  ;;  %v3442_v50 = vld [vmem:[#allocation17 + $0x8] sm:$0xff]  }
 0x642   :  { %v1783_v53 = vadd.f32 %v3178_v52, %v2845_v47  ;;  %v1774_v54 = vpop.f32.mrb[67].mxu0  ;;  %v1836_v56 = vmax.f32 %v1780_v49, 0.0  ;;  %v3441_v49 = vld [vmem:[#allocation17 + $0x48] sm:$0xff]   ;;  %v3444_v52 = vld [vmem:[#allocation17 + $0x10] sm:$0xff]  }
 0x643   :  { %v1775_v55 = vadd.f32 %v2845_v47, %v1774_v54  ;;  %v1834_v58 = vmax.f32 %v1772_v51, 0.0  ;;  %v3443_v51 = vld [vmem:[#allocation17 + $0x50] sm:$0xff]   ;;  %v3447_v54 = vld [vmem:[#allocation17 + $0x60] sm:$0xff]  }
 0x644   :  { %v1837_v57 = vmax.f32 %v1783_v53, 0.0  ;;  %v3446_v53 = vld [vmem:[#allocation17 + $0x18] sm:$0xff]  }
 0x645   :  { %v1835_v59 = vmax.f32 %v1775_v55, 0.0  ;;  %v3448_v55 = vld [vmem:[#allocation17 + $0x20] sm:$0xff]  }
 0x646   :  { %v1851_v60 = vpack.c.bf16 %v1837_v57, %v1836_v56  ;;  %v3449_v56 = vld [vmem:[#allocation17 + $0x68] sm:$0xff]  }
 0x647   :  { %v1850_v61 = vpack.c.bf16 %v1835_v59, %v1834_v58  ;;  %v3450_v57 = vld [vmem:[#allocation17 + $0x28] sm:$0xff]   ;;  %v3451_v58 = vld [vmem:[#allocation17 + $0x70] sm:$0xff]  }
 0x648   :  { %v3452_v59 = vld [vmem:[#allocation17 + $0x30] sm:$0xff]  }
 0x649   :  { %1999 = vmatmul.mubr.bf16.vlgmr.msra.gmra.mrb[64].mxu1 %v1850_v61 }
 0x64a   :  { %2008 = vmatprep.mubr.bf16.mxu1 %v3725_v15 }
 0x64f   :  { %v3181_v62 = vpop.f32.mrb[68].mxu0 }
 0x650   :  { %v1796_v63 = vadd.f32 %v3181_v62, %v2845_v47  ;;  %v1787_v0 = vpop.f32.mrb[69].mxu0 }
 0x651   :  { %v1788_v1 = vadd.f32 %v2845_v47, %v1787_v0  ;;  %v3182_v2 = vpop.f32.mrb[70].mxu0  ;;  %2009 = vmatmul.mubr.bf16.gmra.mrb[68].mxu1 %v1851_v60  ;;  %v1874_v60 = vld [vmem:[%s4268_s14] sm:$0x3] }
 0x652   :  { %v1799_v3 = vadd.f32 %v3182_v2, %v2845_v47  ;;  %v1790_v4 = vpop.f32.mrb[71].mxu0  ;;  %2018 = vmatprep.mubr.bf16.mxu1 %v3725_v15  ;;  %v1840_v37 = vmax.f32 %v1796_v63, 0.0  ;;  %v4140_v61 = vrot.slane %v1874_v60, %v4012_v32  ;;  %v4143_v62 = vrot.slane %v1874_v60, %v4017_v34 }
 0x653   :  { %v1791_v5 = vadd.f32 %v2845_v47, %v1790_v4  ;;  %v1838_v7 = vmax.f32 %v1788_v1, 0.0 }
 0x654   :  { %v1841_v6 = vmax.f32 %v1799_v3, 0.0 }
 0x655   :  { %v1839_v9 = vmax.f32 %v1791_v5, 0.0 }
 0x656   :  { %v1853_v8 = vpack.c.bf16 %v1841_v6, %v1840_v37 }
 0x657   :  { %v1852_v10 = vpack.c.bf16 %v1839_v9, %v1838_v7 }
 0x659   :  { %2019 = vmatmul.mubr.bf16.gmra.mrb[72].mxu1 %v1852_v10 }
 0x65a   :  { %2028 = vmatprep.mubr.bf16.mxu1 %v3725_v15 }
 0x65f   :  { %v3185_v11 = vpop.f32.mrb[72].mxu0 }
 0x660   :  { %v1812_v12 = vadd.f32 %v3185_v11, %v2845_v47  ;;  %v1803_v13 = vpop.f32.mrb[73].mxu0 }
 0x661   :  { %v1804_v14 = vadd.f32 %v2845_v47, %v1803_v13  ;;  %v3186_v16 = vpop.f32.mrb[74].mxu0  ;;  %2029 = vmatmul.mubr.bf16.gmra.mrb[76].mxu1 %v1853_v8 }
 0x662   :  { %v1815_v17 = vadd.f32 %v3186_v16, %v2845_v47  ;;  %v1806_v18 = vpop.f32.mrb[75].mxu0  ;;  %2038 = vmatprep.mubr.bf16.mxu1 %v3725_v15  ;;  %v1844_v20 = vmax.f32 %v1812_v12, 0.0 }
 0x663   :  { %v1807_v19 = vadd.f32 %v2845_v47, %v1806_v18  ;;  %v1842_v22 = vmax.f32 %v1804_v14, 0.0 }
 0x664   :  { %v1845_v21 = vmax.f32 %v1815_v17, 0.0 }
 0x665   :  { %v1843_v23 = vmax.f32 %v1807_v19, 0.0 }
 0x666   :  { %v1855_v24 = vpack.c.bf16 %v1845_v21, %v1844_v20 }
 0x667   :  { %v1854_v25 = vpack.c.bf16 %v1843_v23, %v1842_v22 }
 0x669   :  { %2039 = vmatmul.mubr.bf16.gmra.mrb[80].mxu1 %v1854_v25 }
 0x66a   :  { %2048 = vmatprep.mubr.bf16.mxu1 %v3725_v15 }
 0x66f   :  { %v3189_v26 = vpop.f32.mrb[76].mxu0 }
 0x670   :  { %v1828_v27 = vadd.f32 %v3189_v26, %v2845_v47  ;;  %v1819_v28 = vpop.f32.mrb[77].mxu0 }
 0x671   :  { %v1820_v33 = vadd.f32 %v2845_v47, %v1819_v28  ;;  %v3190_v35 = vpop.f32.mrb[78].mxu0  ;;  %2049 = vmatmul.mubr.bf16.gmra.mrb[84].mxu1 %v1855_v24 }
 0x672   :  { %v1831_v36 = vadd.f32 %v3190_v35, %v2845_v47  ;;  %v1822_v29 = vpop.f32.mrb[79].mxu0  ;;  %2058 = vmatprep.mubr.bf16.mxu1 %v3725_v15  ;;  %v1848_v31 = vmax.f32 %v1828_v27, 0.0 }
 0x673   :  { %v1823_v30 = vadd.f32 %v2845_v47, %v1822_v29  ;;  %v1846_v39 = vmax.f32 %v1820_v33, 0.0  ;;  %v3440_v47 = vld [vmem:[#allocation17] sm:$0xff]  }
 0x674   :  { %v1849_v38 = vmax.f32 %v1831_v36, 0.0  ;;  %3032 = vmatpush3.bf16.msra.mxu1 %v3440_v47 }
 0x675   :  { %v1847_v40 = vmax.f32 %v1823_v30, 0.0  ;;  %3033 = vmatprep.subr.bf16.mxu1 %v3441_v49 }
 0x676   :  { %v1857_v41 = vpack.c.bf16 %v1849_v38, %v1848_v31 }
 0x677   :  { %v1856_v42 = vpack.c.bf16 %v1847_v40, %v1846_v39 }
 0x678   :  { %3034 = vmatpush3.bf16.msra.mxu1 %v3442_v50 }
 0x679   :  { %2059 = vmatmul.mubr.bf16.gmra.mrb[88].mxu1 %v1856_v42  ;;  %3035 = vmatprep.subr.bf16.mxu1 %v3443_v51 }
 0x67a   :  { %2068 = vmatprep.mubr.bf16.mxu1 %v3725_v15  ;;  %v3445_v15 = vld [vmem:[#allocation17 + $0x58] sm:$0xff]  }
 0x67c   :  { %3036 = vmatpush3.bf16.msra.mxu1 %v3444_v52 }
 0x67d   :  { %3037 = vmatprep.subr.bf16.mxu1 %v3445_v15 }
 0x680   :  { %3038 = vmatpush3.bf16.msra.mxu1 %v3446_v53 }
 0x681   :  { %2069 = vmatmul.mubr.bf16.gmra.mrb[92].mxu1 %v1857_v41  ;;  %3039 = vmatprep.subr.bf16.mxu1 %v3447_v54 }
 0x684   :  { %3040 = vmatpush3.bf16.msra.mxu1 %v3448_v55 }
 0x685   :  { %3041 = vmatprep.subr.bf16.mxu1 %v3449_v56 }
 0x688   :  { %3042 = vmatpush3.bf16.msra.mxu1 %v3450_v57 }
 0x689   :  { %3043 = vmatprep.subr.bf16.mxu1 %v3451_v58 }
 0x68c   :  { %3044 = vmatpush3.bf16.msra.mxu1 %v3452_v59 }
 0x71c   :  { %v2000_v63 = vpop.f32.mrb[64].mxu1 }
 0x71d   :  { %v2001_v0 = vadd.f32 %v2000_v63, %v4140_v61  ;;  %v2002_v1 = vpop.f32.mrb[65].mxu1 }
 0x71e   :  { %v2003_v2 = vadd.f32 %v2002_v1, %v4143_v62  ;;  %v2004_v3 = vpop.f32.mrb[66].mxu1 }
 0x71f   :  { %v2005_v4 = vadd.f32 %v2004_v3, %v4140_v61  ;;  %v2006_v5 = vpop.f32.mrb[67].mxu1  ;;  %v2079_v6 = vmax.f32 %v2001_v0, 0.0 }
 0x720   :  { %v2007_v37 = vadd.f32 %v2006_v5, %v4143_v62  ;;  %v2080_v9 = vmax.f32 %v2003_v2, 0.0 }
 0x721   :  { %v2081_v7 = vmax.f32 %v2005_v4, 0.0 }
 0x722   :  { %v2082_v8 = vmax.f32 %v2007_v37, 0.0 }
 0x723   :  { %v2111_v10 = vpack.c.bf16 %v2081_v7, %v2079_v6 }
 0x724   :  { %v2112_v11 = vpack.c.bf16 %v2082_v8, %v2080_v9  ;;  %v2010_v12 = vpop.f32.mrb[68].mxu1 }
 0x725   :  { %v2011_v13 = vadd.f32 %v2010_v12, %v4140_v61  ;;  %v2012_v14 = vpop.f32.mrb[69].mxu1 }
 0x726   :  { %v2013_v16 = vadd.f32 %v2012_v14, %v4143_v62  ;;  %v2014_v17 = vpop.f32.mrb[70].mxu1  ;;  %2363 = vmatprep.mubr.bf16.mxu0 %v2112_v11 }
 0x727   :  { %v2015_v18 = vadd.f32 %v2014_v17, %v4140_v61  ;;  %v2016_v19 = vpop.f32.mrb[71].mxu1  ;;  %2364 = vmatmul.mubr.bf16.vlgmr.msra.gmra.mrb[80].mxu0 %v2111_v10  ;;  %v2083_v21 = vmax.f32 %v2011_v13, 0.0 }
 0x728   :  { %v2017_v20 = vadd.f32 %v2016_v19, %v4143_v62  ;;  %v2084_v23 = vmax.f32 %v2013_v16, 0.0 }
 0x729   :  { %v2085_v22 = vmax.f32 %v2015_v18, 0.0 }
 0x72a   :  { %v2086_v24 = vmax.f32 %v2017_v20, 0.0 }
 0x72b   :  { %v2113_v25 = vpack.c.bf16 %v2085_v22, %v2083_v21 }
 0x72c   :  { %v2114_v26 = vpack.c.bf16 %v2086_v24, %v2084_v23  ;;  %v2020_v27 = vpop.f32.mrb[72].mxu1 }
 0x72d   :  { %v2021_v28 = vadd.f32 %v2020_v27, %v4140_v61  ;;  %v2022_v33 = vpop.f32.mrb[73].mxu1 }
 0x72e   :  { %v2023_v35 = vadd.f32 %v2022_v33, %v4143_v62  ;;  %v2024_v36 = vpop.f32.mrb[74].mxu1  ;;  %2373 = vmatprep.mubr.bf16.mxu0 %v2114_v26 }
 0x72f   :  { %v2025_v29 = vadd.f32 %v2024_v36, %v4140_v61  ;;  %v2026_v30 = vpop.f32.mrb[75].mxu1  ;;  %2374 = vmatmul.mubr.bf16.gmra.mrb[84].mxu0 %v2113_v25  ;;  %v2087_v38 = vmax.f32 %v2021_v28, 0.0 }
 0x730   :  { %v2027_v31 = vadd.f32 %v2026_v30, %v4143_v62  ;;  %v2088_v40 = vmax.f32 %v2023_v35, 0.0 }
 0x731   :  { %v2089_v39 = vmax.f32 %v2025_v29, 0.0 }
 0x732   :  { %v2090_v41 = vmax.f32 %v2027_v31, 0.0 }
 0x733   :  { %v2115_v42 = vpack.c.bf16 %v2089_v39, %v2087_v38 }
 0x734   :  { %v2116_v43 = vpack.c.bf16 %v2090_v41, %v2088_v40  ;;  %v2030_v44 = vpop.f32.mrb[76].mxu1 }
 0x735   :  { %v2031_v45 = vadd.f32 %v2030_v44, %v4140_v61  ;;  %v2032_v46 = vpop.f32.mrb[77].mxu1 }
 0x736   :  { %v2033_v48 = vadd.f32 %v2032_v46, %v4143_v62  ;;  %v2034_v47 = vpop.f32.mrb[78].mxu1  ;;  %2383 = vmatprep.mubr.bf16.mxu0 %v2116_v43 }
 0x737   :  { %v2035_v49 = vadd.f32 %v2034_v47, %v4140_v61  ;;  %v2036_v50 = vpop.f32.mrb[79].mxu1  ;;  %2384 = vmatmul.mubr.bf16.gmra.mrb[88].mxu0 %v2115_v42  ;;  %v2091_v52 = vmax.f32 %v2031_v45, 0.0 }
 0x738   :  { %v2037_v51 = vadd.f32 %v2036_v50, %v4143_v62  ;;  %v2092_v53 = vmax.f32 %v2033_v48, 0.0 }
 0x739   :  { %v2093_v15 = vmax.f32 %v2035_v49, 0.0 }
 0x73a   :  { %v2094_v54 = vmax.f32 %v2037_v51, 0.0 }
 0x73b   :  { %v2117_v55 = vpack.c.bf16 %v2093_v15, %v2091_v52 }
 0x73c   :  { %v2118_v56 = vpack.c.bf16 %v2094_v54, %v2092_v53  ;;  %v2040_v57 = vpop.f32.mrb[80].mxu1  ;;  %v3453_v53 = vld [vmem:[#allocation17 + $0x78] sm:$0xff]  }
 0x73d   :  { %v2041_v58 = vadd.f32 %v2040_v57, %v4140_v61  ;;  %v2042_v59 = vpop.f32.mrb[81].mxu1  ;;  %v3454_v54 = vld [vmem:[#allocation17 + $0x38] sm:$0xff]   ;;  %3045 = vmatprep.subr.bf16.mxu1 %v3453_v53 }
 0x73e   :  { %v2043_v60 = vadd.f32 %v2042_v59, %v4143_v62  ;;  %v2044_v63 = vpop.f32.mrb[82].mxu1  ;;  %2393 = vmatprep.mubr.bf16.mxu0 %v2118_v56  ;;  %3046 = vmatpush3.bf16.msra.mxu1 %v3454_v54 }
 0x73f   :  { %v2045_v0 = vadd.f32 %v2044_v63, %v4140_v61  ;;  %v2046_v1 = vpop.f32.mrb[83].mxu1  ;;  %2394 = vmatmul.mubr.bf16.gmra.mrb[92].mxu0 %v2117_v55  ;;  %v2095_v3 = vmax.f32 %v2041_v58, 0.0 }
 0x740   :  { %v2047_v2 = vadd.f32 %v2046_v1, %v4143_v62  ;;  %v2096_v5 = vmax.f32 %v2043_v60, 0.0 }
 0x741   :  { %v2097_v4 = vmax.f32 %v2045_v0, 0.0 }
 0x742   :  { %v2098_v37 = vmax.f32 %v2047_v2, 0.0 }
 0x743   :  { %v2119_v6 = vpack.c.bf16 %v2097_v4, %v2095_v3 }
 0x744   :  { %v2120_v7 = vpack.c.bf16 %v2098_v37, %v2096_v5  ;;  %v2050_v9 = vpop.f32.mrb[84].mxu1 }
 0x745   :  { %v2051_v8 = vadd.f32 %v2050_v9, %v4140_v61  ;;  %v2052_v10 = vpop.f32.mrb[85].mxu1 }
 0x746   :  { %v2053_v11 = vadd.f32 %v2052_v10, %v4143_v62  ;;  %v2054_v12 = vpop.f32.mrb[86].mxu1  ;;  %2403 = vmatprep.mubr.bf16.mxu0 %v2120_v7 }
 0x747   :  { %v2055_v13 = vadd.f32 %v2054_v12, %v4140_v61  ;;  %v2056_v14 = vpop.f32.mrb[87].mxu1  ;;  %2404 = vmatmul.mubr.bf16.gmra.mrb[96].mxu0 %v2119_v6  ;;  %v2099_v17 = vmax.f32 %v2051_v8, 0.0 }
 0x748   :  { %v2057_v16 = vadd.f32 %v2056_v14, %v4143_v62  ;;  %v2100_v19 = vmax.f32 %v2053_v11, 0.0 }
 0x749   :  { %v2101_v18 = vmax.f32 %v2055_v13, 0.0 }
 0x74a   :  { %v2102_v20 = vmax.f32 %v2057_v16, 0.0 }
 0x74b   :  { %v2121_v21 = vpack.c.bf16 %v2101_v18, %v2099_v17 }
 0x74c   :  { %v2122_v22 = vpack.c.bf16 %v2102_v20, %v2100_v19  ;;  %v2060_v23 = vpop.f32.mrb[88].mxu1 }
 0x74d   :  { %v2061_v24 = vadd.f32 %v2060_v23, %v4140_v61  ;;  %v2062_v25 = vpop.f32.mrb[89].mxu1 }
 0x74e   :  { %v2063_v26 = vadd.f32 %v2062_v25, %v4143_v62  ;;  %v2064_v27 = vpop.f32.mrb[90].mxu1  ;;  %2413 = vmatprep.mubr.bf16.mxu0 %v2122_v22 }
 0x74f   :  { %v2065_v28 = vadd.f32 %v2064_v27, %v4140_v61  ;;  %v2066_v33 = vpop.f32.mrb[91].mxu1  ;;  %2414 = vmatmul.mubr.bf16.gmra.mrb[100].mxu0 %v2121_v21  ;;  %v2103_v36 = vmax.f32 %v2061_v24, 0.0 }
 0x750   :  { %v2067_v35 = vadd.f32 %v2066_v33, %v4143_v62  ;;  %v2104_v30 = vmax.f32 %v2063_v26, 0.0 }
 0x751   :  { %v2105_v29 = vmax.f32 %v2065_v28, 0.0 }
 0x752   :  { %v2106_v31 = vmax.f32 %v2067_v35, 0.0 }
 0x753   :  { %v2123_v38 = vpack.c.bf16 %v2105_v29, %v2103_v36 }
 0x754   :  { %v2124_v39 = vpack.c.bf16 %v2106_v31, %v2104_v30  ;;  %v2070_v40 = vpop.f32.mrb[92].mxu1 }
 0x755   :  { %v2071_v41 = vadd.f32 %v2070_v40, %v4140_v61  ;;  %v2072_v42 = vpop.f32.mrb[93].mxu1 }
 0x756   :  { %v2073_v43 = vadd.f32 %v2072_v42, %v4143_v62  ;;  %v2074_v44 = vpop.f32.mrb[94].mxu1  ;;  %2423 = vmatprep.mubr.bf16.mxu0 %v2124_v39 }
 0x757   :  { %v2075_v45 = vadd.f32 %v2074_v44, %v4140_v61  ;;  %v2076_v46 = vpop.f32.mrb[95].mxu1  ;;  %2424 = vmatmul.mubr.bf16.gmra.mrb[104].mxu0 %v2123_v38  ;;  %v2107_v47 = vmax.f32 %v2071_v41, 0.0  ;;  %v2159_v61 = vld [vmem:[%s4270_s16] sm:$0x3] }
 0x758   :  { %v2077_v48 = vadd.f32 %v2076_v46, %v4143_v62  ;;  %v2108_v50 = vmax.f32 %v2073_v43, 0.0  ;;  %v4181_v55 = vrot.slane %v2159_v61, %v4012_v32  ;;  %v4184_v56 = vrot.slane %v2159_v61, %v4017_v34 }
 0x759   :  { %v2109_v49 = vmax.f32 %v2075_v45, 0.0 }
 0x75a   :  { %v2110_v51 = vmax.f32 %v2077_v48, 0.0 }
 0x75b   :  { %v2125_v52 = vpack.c.bf16 %v2109_v49, %v2107_v47 }
 0x75c   :  { %v2126_v15 = vpack.c.bf16 %v2110_v51, %v2108_v50 }
 0x75e   :  { %2433 = vmatprep.mubr.bf16.mxu0 %v2126_v15 }
 0x75f   :  { %2434 = vmatmul.mubr.bf16.gmra.mrb[108].mxu0 %v2125_v52 }
 0x7fa   :  { %v2365_v62 = vpop.f32.mrb[80].mxu0 }
 0x7fb   :  { %v2367_v57 = vpop.f32.mrb[81].mxu0  ;;  %v2366_v59 = vadd.f32 %v2365_v62, %v4181_v55 }
 0x7fc   :  { %v2369_v58 = vpop.f32.mrb[82].mxu0  ;;  %v2368_v0 = vadd.f32 %v2367_v57, %v4184_v56 }
 0x7fd   :  { %v2370_v60 = vadd.f32 %v2369_v58, %v4181_v55  ;;  %v2371_v63 = vpop.f32.mrb[83].mxu0 }
 0x7fe   :  { %v2372_v1 = vadd.f32 %v2371_v63, %v4184_v56 }
 0x7ff   :  { %v2444_v2 = vpack.c.bf16 %v2370_v60, %v2366_v59 }
 0x800   :  { %v2445_v3 = vpack.c.bf16 %v2372_v1, %v2368_v0 }
 0x802   :  { %v2375_v4 = vpop.f32.mrb[84].mxu0  ;;  %2627 = vmatprep.mubr.bf16.mxu1 %v2445_v3 }
 0x803   :  { %v2377_v32 = vpop.f32.mrb[85].mxu0  ;;  %2628 = vmatmul.mubr.bf16.vlgmr.msra.gmra.mrb[96].mxu1 %v2444_v2  ;;  %v2376_v34 = vadd.f32 %v2375_v4, %v4181_v55 }
 0x804   :  { %v2379_v5 = vpop.f32.mrb[86].mxu0  ;;  %v2378_v7 = vadd.f32 %v2377_v32, %v4184_v56 }
 0x805   :  { %v2380_v37 = vadd.f32 %v2379_v5, %v4181_v55  ;;  %v2381_v6 = vpop.f32.mrb[87].mxu0 }
 0x806   :  { %v2382_v9 = vadd.f32 %v2381_v6, %v4184_v56 }
 0x807   :  { %v2446_v8 = vpack.c.bf16 %v2380_v37, %v2376_v34 }
 0x808   :  { %v2447_v10 = vpack.c.bf16 %v2382_v9, %v2378_v7 }
 0x80a   :  { %v2385_v11 = vpop.f32.mrb[88].mxu0  ;;  %2635 = vmatprep.mubr.bf16.mxu1 %v2447_v10  ;;  %v4221_v10 = vld [vmem:[%s4272_s18] ss:$0 sm:$0xff]  ;;  %s3726_s18 = smov [#allocation19]  }
 0x80b   :  { %v2387_v12 = vpop.f32.mrb[89].mxu0  ;;  %2636 = vmatmul.mubr.bf16.gmra.mrb[100].mxu1 %v2446_v8  ;;  %v2386_v14 = vadd.f32 %v2385_v11, %v4181_v55  ;;  %s2713_s7 = sshll.u32 %s3726_s18, 4  ;;  %s2714_s7 = int_to_ptr.vmem [resolvable:$true] %s2713_s7 }
 0x80c   :  { %v2389_v13 = vpop.f32.mrb[90].mxu0  ;;  %v2388_v18 = vadd.f32 %v2387_v12, %v4184_v56  ;;  %s3675_s13 = scalar_lea.vmem %s2714_s7, 2048  ;;  %p3680_p11 = scmp.lt.s32.totalorder %s2714_s7, %s2714_s7 }
 0x80d   :  { %v2390_v16 = vadd.f32 %v2389_v13, %v4181_v55  ;;  %v2391_v17 = vpop.f32.mrb[91].mxu0  ;;  %p3676_p10 = scmp.ne.s32.totalorder %s2714_s7, %s3675_s13  ;;  %p3681_p12 = scmp.lt.s32.totalorder %s3675_s13, %s3675_s13 }
 0x80e   :  { %v2392_v19 = vadd.f32 %v2391_v17, %v4184_v56 }
 0x80f   :  { %v2448_v20 = vpack.c.bf16 %v2390_v16, %v2386_v14  ;;  %p3682_p13 = por %p3681_p12, %p3680_p11 }
 0x810   :  { %v2449_v21 = vpack.c.bf16 %v2392_v19, %v2388_v18 }
 0x811   :  { %p3683_p0 = pnand %p3682_p13, %p3676_p10 }
 0x812   :  { %v2395_v22 = vpop.f32.mrb[92].mxu0  ;;  %2643 = vmatprep.mubr.bf16.mxu1 %v2449_v21 }
 0x813   :  { %v2397_v23 = vpop.f32.mrb[93].mxu0  ;;  %2644 = vmatmul.mubr.bf16.gmra.mrb[104].mxu1 %v2448_v20  ;;  %v2396_v25 = vadd.f32 %v2395_v22, %v4181_v55 }
 0x814   :  { %v2399_v24 = vpop.f32.mrb[94].mxu0  ;;  %v2398_v28 = vadd.f32 %v2397_v23, %v4184_v56 }
 0x815   :  { %v2400_v26 = vadd.f32 %v2399_v24, %v4181_v55  ;;  %v2401_v27 = vpop.f32.mrb[95].mxu0 }
 0x816   :  { %v2402_v33 = vadd.f32 %v2401_v27, %v4184_v56 }
 0x817   :  { %v2450_v35 = vpack.c.bf16 %v2400_v26, %v2396_v25 }
 0x818   :  { %v2451_v36 = vpack.c.bf16 %v2402_v33, %v2398_v28 }
 0x81a   :  { %v2405_v29 = vpop.f32.mrb[96].mxu0  ;;  %2651 = vmatprep.mubr.bf16.mxu1 %v2451_v36 }
 0x81b   :  { %v2407_v30 = vpop.f32.mrb[97].mxu0  ;;  %2652 = vmatmul.mubr.bf16.gmra.mrb[108].mxu1 %v2450_v35  ;;  %v2406_v38 = vadd.f32 %v2405_v29, %v4181_v55 }
 0x81c   :  { %v2409_v31 = vpop.f32.mrb[98].mxu0  ;;  %v2408_v41 = vadd.f32 %v2407_v30, %v4184_v56 }
 0x81d   :  { %v2410_v39 = vadd.f32 %v2409_v31, %v4181_v55  ;;  %v2411_v40 = vpop.f32.mrb[99].mxu0 }
 0x81e   :  { %v2412_v42 = vadd.f32 %v2411_v40, %v4184_v56 }
 0x81f   :  { %v2452_v43 = vpack.c.bf16 %v2410_v39, %v2406_v38 }
 0x820   :  { %v2453_v44 = vpack.c.bf16 %v2412_v42, %v2408_v41 }
 0x822   :  { %v2415_v45 = vpop.f32.mrb[100].mxu0  ;;  %2659 = vmatprep.mubr.bf16.mxu1 %v2453_v44 }
 0x823   :  { %v2417_v46 = vpop.f32.mrb[101].mxu0  ;;  %2660 = vmatmul.mubr.bf16.gmra.mrb[112].mxu1 %v2452_v43  ;;  %v2416_v47 = vadd.f32 %v2415_v45, %v4181_v55 }
 0x824   :  { %v2419_v48 = vpop.f32.mrb[102].mxu0  ;;  %v2418_v51 = vadd.f32 %v2417_v46, %v4184_v56 }
 0x825   :  { %v2420_v49 = vadd.f32 %v2419_v48, %v4181_v55  ;;  %v2421_v50 = vpop.f32.mrb[103].mxu0 }
 0x826   :  { %v2422_v52 = vadd.f32 %v2421_v50, %v4184_v56 }
 0x827   :  { %v2454_v15 = vpack.c.bf16 %v2420_v49, %v2416_v47 }
 0x828   :  { %v2455_v53 = vpack.c.bf16 %v2422_v52, %v2418_v51 }
 0x82a   :  { %v2425_v54 = vpop.f32.mrb[104].mxu0  ;;  %2667 = vmatprep.mubr.bf16.mxu1 %v2455_v53 }
 0x82b   :  { %v2427_v61 = vpop.f32.mrb[105].mxu0  ;;  %2668 = vmatmul.mubr.bf16.gmra.mrb[116].mxu1 %v2454_v15  ;;  %v2426_v57 = vadd.f32 %v2425_v54, %v4181_v55 }
 0x82c   :  { %v2429_v62 = vpop.f32.mrb[106].mxu0  ;;  %v2428_v60 = vadd.f32 %v2427_v61, %v4184_v56 }
 0x82d   :  { %v2430_v58 = vadd.f32 %v2429_v62, %v4181_v55  ;;  %v2431_v59 = vpop.f32.mrb[107].mxu0 }
 0x82e   :  { %v2432_v63 = vadd.f32 %v2431_v59, %v4184_v56 }
 0x82f   :  { %v2456_v0 = vpack.c.bf16 %v2430_v58, %v2426_v57 }
 0x830   :  { %v2457_v1 = vpack.c.bf16 %v2432_v63, %v2428_v60 }
 0x832   :  { %v2435_v2 = vpop.f32.mrb[108].mxu0  ;;  %2675 = vmatprep.mubr.bf16.mxu1 %v2457_v1 }
 0x833   :  { %v2437_v3 = vpop.f32.mrb[109].mxu0  ;;  %2676 = vmatmul.mubr.bf16.gmra.mrb[120].mxu1 %v2456_v0  ;;  %v2436_v32 = vadd.f32 %v2435_v2, %v4181_v55 }
 0x834   :  { %v2439_v4 = vpop.f32.mrb[110].mxu0  ;;  %v2438_v37 = vadd.f32 %v2437_v3, %v4184_v56 }
 0x835   :  { %v2440_v5 = vadd.f32 %v2439_v4, %v4181_v55  ;;  %v2441_v34 = vpop.f32.mrb[111].mxu0 }
 0x836   :  { %v2442_v6 = vadd.f32 %v2441_v34, %v4184_v56 }
 0x837   :  { %v2458_v7 = vpack.c.bf16 %v2440_v5, %v2436_v32 }
 0x838   :  { %v2459_v9 = vpack.c.bf16 %v2442_v6, %v2438_v37 }
 0x83a   :  { %2683 = vmatprep.mubr.bf16.mxu1 %v2459_v9 }
 0x83b   :  { %2684 = vmatmul.mubr.bf16.gmra.mrb[124].mxu1 %v2458_v7 }
 0x8d6   :  { %v3047_v8 = vpop.f32.mrb[96].mxu1 }
 0x8d7   :  { %v3048_v11 = vpop.f32.mrb[97].mxu1 }
 0x8d8   :  { %v3049_v12 = vadd.f32 %v3048_v11, %v3047_v8  ;;  %v3050_v13 = vpop.f32.mrb[98].mxu1 }
 0x8d9   :  { %v3051_v14 = vpop.f32.mrb[99].mxu1 }
 0x8da   :  { %v2630_v55 = vadd.f32 %v3049_v12, %v4221_v10  ;;  %v3052_v16 = vadd.f32 %v3051_v14, %v3050_v13 }
 0x8dc   :  { %2692 = vst [vmem:[#allocation19] sm:$0xff] %v2630_v55  ;;  %v2633_v56 = vadd.f32 %v3052_v16, %v4221_v10 }
 0x8de   :  { %2693 = vst [vmem:[#allocation19 + $0x8] sm:$0xff] %v2633_v56  ;;  %v3053_v17 = vpop.f32.mrb[100].mxu1 }
 0x8df   :  { %v3054_v18 = vpop.f32.mrb[101].mxu1 }
 0x8e0   :  { %v3055_v19 = vadd.f32 %v3054_v18, %v3053_v17  ;;  %v3056_v20 = vpop.f32.mrb[102].mxu1 }
 0x8e1   :  { %v3057_v21 = vpop.f32.mrb[103].mxu1 }
 0x8e2   :  { %v2638_v22 = vadd.f32 %v3055_v19, %v4221_v10  ;;  %v3058_v23 = vadd.f32 %v3057_v21, %v3056_v20 }
 0x8e4   :  { %2694 = vst [vmem:[#allocation19 + $0x10] sm:$0xff] %v2638_v22  ;;  %v2641_v24 = vadd.f32 %v3058_v23, %v4221_v10 }
 0x8e6   :  { %2695 = vst [vmem:[#allocation19 + $0x18] sm:$0xff] %v2641_v24  ;;  %v3059_v25 = vpop.f32.mrb[104].mxu1 }
 0x8e7   :  { %v3060_v26 = vpop.f32.mrb[105].mxu1 }
 0x8e8   :  { %v3061_v27 = vadd.f32 %v3060_v26, %v3059_v25  ;;  %v3062_v28 = vpop.f32.mrb[106].mxu1 }
 0x8e9   :  { %v3063_v33 = vpop.f32.mrb[107].mxu1 }
 0x8ea   :  { %v2646_v35 = vadd.f32 %v3061_v27, %v4221_v10  ;;  %v3064_v36 = vadd.f32 %v3063_v33, %v3062_v28 }
 0x8ec   :  { %2696 = vst [vmem:[#allocation19 + $0x20] sm:$0xff] %v2646_v35  ;;  %v2649_v29 = vadd.f32 %v3064_v36, %v4221_v10 }
 0x8ee   :  { %2697 = vst [vmem:[#allocation19 + $0x28] sm:$0xff] %v2649_v29  ;;  %v3065_v30 = vpop.f32.mrb[108].mxu1 }
 0x8ef   :  { %v3066_v31 = vpop.f32.mrb[109].mxu1 }
 0x8f0   :  { %v3067_v38 = vadd.f32 %v3066_v31, %v3065_v30  ;;  %v3068_v39 = vpop.f32.mrb[110].mxu1 }
 0x8f1   :  { %v3069_v40 = vpop.f32.mrb[111].mxu1 }
 0x8f2   :  { %v2654_v41 = vadd.f32 %v3067_v38, %v4221_v10  ;;  %v3070_v42 = vadd.f32 %v3069_v40, %v3068_v39 }
 0x8f4   :  { %2698 = vst [vmem:[#allocation19 + $0x30] sm:$0xff] %v2654_v41  ;;  %v2657_v43 = vadd.f32 %v3070_v42, %v4221_v10 }
 0x8f6   :  { %2699 = vst [vmem:[#allocation19 + $0x38] sm:$0xff] %v2657_v43  ;;  %v3071_v44 = vpop.f32.mrb[112].mxu1 }
 0x8f7   :  { %v3072_v45 = vpop.f32.mrb[113].mxu1 }
 0x8f8   :  { %v3073_v46 = vadd.f32 %v3072_v45, %v3071_v44  ;;  %v3074_v48 = vpop.f32.mrb[114].mxu1 }
 0x8f9   :  { %v3075_v47 = vpop.f32.mrb[115].mxu1 }
 0x8fa   :  { %v2662_v49 = vadd.f32 %v3073_v46, %v4221_v10  ;;  %v3076_v50 = vadd.f32 %v3075_v47, %v3074_v48 }
 0x8fc   :  { %2700 = vst [vmem:[#allocation19 + $0x40] sm:$0xff] %v2662_v49  ;;  %v2665_v51 = vadd.f32 %v3076_v50, %v4221_v10 }
 0x8fe   :  { %2701 = vst [vmem:[#allocation19 + $0x48] sm:$0xff] %v2665_v51  ;;  %v3077_v52 = vpop.f32.mrb[116].mxu1 }
 0x8ff   :  { %v3078_v15 = vpop.f32.mrb[117].mxu1 }
 0x900   :  { %v3079_v53 = vadd.f32 %v3078_v15, %v3077_v52  ;;  %v3080_v54 = vpop.f32.mrb[118].mxu1 }
 0x901   :  { %v3081_v61 = vpop.f32.mrb[119].mxu1 }
 0x902   :  { %v2670_v62 = vadd.f32 %v3079_v53, %v4221_v10  ;;  %v3082_v57 = vadd.f32 %v3081_v61, %v3080_v54 }
 0x904   :  { %2702 = vst [vmem:[#allocation19 + $0x50] sm:$0xff] %v2670_v62  ;;  %v2673_v58 = vadd.f32 %v3082_v57, %v4221_v10 }
 0x906   :  { %2703 = vst [vmem:[#allocation19 + $0x58] sm:$0xff] %v2673_v58  ;;  %v3083_v59 = vpop.f32.mrb[120].mxu1 }
 0x907   :  { %v3084_v60 = vpop.f32.mrb[121].mxu1 }
 0x908   :  { %v3085_v63 = vadd.f32 %v3084_v60, %v3083_v59  ;;  %v3086_v0 = vpop.f32.mrb[122].mxu1 }
 0x909   :  { %v3087_v1 = vpop.f32.mrb[123].mxu1 }
 0x90a   :  { %v2678_v2 = vadd.f32 %v3085_v63, %v4221_v10  ;;  %v3088_v3 = vadd.f32 %v3087_v1, %v3086_v0 }
 0x90c   :  { %2704 = vst [vmem:[#allocation19 + $0x60] sm:$0xff] %v2678_v2  ;;  %v2681_v4 = vadd.f32 %v3088_v3, %v4221_v10 }
 0x90e   :  { %2705 = vst [vmem:[#allocation19 + $0x68] sm:$0xff] %v2681_v4  ;;  %v3089_v32 = vpop.f32.mrb[124].mxu1 }
 0x90f   :  { %v3090_v5 = vpop.f32.mrb[125].mxu1 }
 0x910   :  { %v3091_v34 = vadd.f32 %v3090_v5, %v3089_v32  ;;  %v3092_v37 = vpop.f32.mrb[126].mxu1 }
 0x911   :  { %v3093_v6 = vpop.f32.mrb[127].mxu1 }
 0x912   :  { %v2686_v7 = vadd.f32 %v3091_v34, %v4221_v10  ;;  %v3094_v9 = vadd.f32 %v3093_v6, %v3092_v37 }
 0x914   :  { %2706 = vst [vmem:[#allocation19 + $0x70] sm:$0xff] %v2686_v7  ;;  %v2689_v8 = vadd.f32 %v3094_v9, %v4221_v10 }
 0x916   :  { %2707 = vst [vmem:[#allocation19 + $0x78] sm:$0xff] %v2689_v8 }
 0x917   :  { %3686 = shalt.err (!%p3683_p0)
}
 0x918   :  { %s4296_s21 = sld [smem:[#allocation31_spill]] }
 0x91e   :  { %s3687_s29 = scalar_lea.hbm %s4296_s21, 2048 }
 0x91f   :  { %p3688_p1 = scmp.ne.s32.totalorder %s4296_s21, %s3687_s29  ;;  %p3691_p2 = scmp.lt.u32.totalorder %s3687_s29, %s4296_s21 }
 0x921   :  { %p3693_p3 = pnand %p3691_p2, %p3688_p1 }
 0x923   :  { %3696 = shalt.err (!%p3693_p3)
}
 0x924   :  { %2719 = dma.vmem_to_hbm [thread:$0]  %s2714_s7, 2048, %s4296_s21, [#allocation4], %s4291_s22, %s4291_s22, %s4290_s9  }
 0x925   :  { %3709 = dma.done.wait [#allocation4], 2048  }
 0x926   :  { %3710 = vsyncadd [#allocation4], 4294965248 }
 0x927   :  { %2723 = vsyncpa [#allocation3], 1 }
 0x928   :  { %2724 = vsyncpa [#allocation6], 1 }
 0x929   :  { %2725 = vsyncpa [#allocation9], 1 }
 0x92a   :  { %2726 = vsyncpa [#allocation12], 1 }
 0x92b   :  { %2727 = vsyncpa [#allocation15], 1 }
 0x92c   :  { %2728 = vsyncpa [#allocation18], 1 }
 0x92d   :  { %2729 = vsyncpa [#allocation4], 1 }

</bundles_post_ra>
